<compile_context>
chip_gen: v7x
topology: tpu7x:2x2x1
jax: 0.10.0
libtpu: 0.0.40
codegen_flags: <defaults>
</compile_context>

<pallas_src>
import jax
import jax.numpy as jnp
from jax import lax
from jax.experimental import pallas as pl
from jax.experimental.pallas import tpu as pltpu

# Small, forward-consistent shapes (scaled down from the real module:
# vocab_size_Q6 -> 64, n_hidden 256 -> 32, n_layers 4 -> 2).
VOCAB = 64
VOCAB_PAD = 128          # lane-dense padded vocab (zero-padded, sliced off)
EMB = 100                # GloVe dim from the module
HIDDEN = 32              # n_hidden (scaled down)
GATES = 4 * HIDDEN       # 128 -> exactly one lane-dense gate vector per layer
LAYERS = 2               # n_layers (scaled down); wavefront written for 2
BATCH = 2
B_PAD = 8                # sublane-friendly padded batch
SEQ = 8
STATE_W = 4 * HIDDEN     # packed state slab [h1|c1|h2|c2] -> 128 lanes


# ------------------------------ fused kernel --------------------------------
def _make_fused_kernel(seq, b_pad, hidden):
    H = hidden
    G = 4 * H
    TB = seq * b_pad
    f32 = jnp.float32
    bf16 = jnp.bfloat16

    def kernel(tok_ref, weff_ref, b1_ref, wblk_ref, b2_ref, st_ref,
               fcw_ref, fcb_ref, logits_ref, st_out_ref, gx_sc, h2_sc):
        vocab_pad = weff_ref.shape[0]

        # ---- Embedding folded into layer-1's input projection (eval-exact).
        # One hoisted (TB, V_pad) @ (V_pad, 4H) MXU call for the whole
        # sequence; combined bias b_ih1 + b_hh1 folded in.
        onehot = (lax.broadcasted_iota(jnp.int32, (TB, vocab_pad), 1)
                  == tok_ref[...]).astype(bf16)
        gx_sc[...] = (jnp.dot(onehot, weff_ref[...],
                              preferred_element_type=f32)
                      + b1_ref[...])

        # ---- Unpack lane-dense state slab [h1|c1|h2|c2].
        st = st_ref[...]
        h1 = st[:, 0 * H:1 * H]
        c1 = st[:, 1 * H:2 * H]
        h2 = st[:, 2 * H:3 * H]
        c2 = st[:, 3 * H:4 * H]

        # Hoisted loads / broadcasts (JAX does not CSE broadcast_in_dim).
        wblk = wblk_ref[...]                                  # (2H, 8H) bf16
        b2b = jnp.broadcast_to(b2_ref[...], (b_pad, G))       # (B, 4H)

        # ---- Two-layer wavefront over T+1 static steps.
        # Wave s: layer-1 runs time step s (if s < T), layer-2 runs time step
        # s-1 (if s >= 1).  Both share one block-diagonal matmul:
        #   [h1 | h2] @ w_blk = [h1@W_hh1^T | h1@W_ih2^T + h2@W_hh2^T]
        for s in range(seq + 1):
            l1 = s < seq
            l2 = s >= 1
            r0 = min(s, seq - 1) * b_pad            # gx1 slice (ignored at s=T)
            hc = jnp.concatenate([h1, h2], axis=1).astype(bf16)   # (B, 2H)
            # v7x note: bias added after the pop so the MRB in-place
            # accumulate path can absorb it; sequential MRF elsewhere.
            gates = jnp.dot(hc, wblk, preferred_element_type=f32)  # (B, 8H)
            gates = gates + jnp.concatenate(
                [gx_sc[r0:r0 + b_pad, :], b2b], axis=1)
            # Full-vreg transcendentals (two lane-dense vregs each) instead of
            # eight 32-lane slices; gate pieces are sliced out afterwards.
            sig = jax.nn.sigmoid(gates)
            th = jnp.tanh(gates)
            if l1:
                c1 = (sig[:, 1 * H:2 * H] * c1
                      + sig[:, 0 * H:1 * H] * th[:, 2 * H:3 * H])
            if l2:
                c2 = (sig[:, 5 * H:6 * H] * c2
                      + sig[:, 4 * H:5 * H] * th[:, 6 * H:7 * H])
            if l1 and l2:
                tc = jnp.tanh(jnp.concatenate([c1, c2], axis=1))  # one push
                h1 = sig[:, 3 * H:4 * H] * tc[:, 0:H]
                h2 = sig[:, 7 * H:8 * H] * tc[:, H:2 * H]
            elif l1:
                h1 = sig[:, 3 * H:4 * H] * jnp.tanh(c1)
            else:
                h2 = sig[:, 7 * H:8 * H] * jnp.tanh(c2)
            if l2:
                # Stage layer-2 output for the single fused FC matmul below.
                h2_sc[(s - 1) * b_pad:s * b_pad, :] = h2

        # Lane-dense (B, 128) state store; aliased with the state input.
        st_out_ref[...] = jnp.concatenate([h1, c1, h2, c2], axis=1)

        # ---- Dropout: identity in eval mode.
        # TODO(synk): training-mode nn.Dropout / inter-layer LSTM dropout are
        # stochastic; intentionally identity here (eval semantics).

        # ---- Final Linear over the whole time-major slab, lane-dense out.
        logits_ref[...] = (jnp.dot(h2_sc[...].astype(bf16), fcw_ref[...],
                                   preferred_element_type=f32)
                           + fcb_ref[...])

    return kernel


# ------------------------------ parameter setup ------------------------------
def init_params(key):
    keys = jax.random.split(key, 11)
    (k_emb, k_wih1, k_whh1, k_bih1, k_bhh1,
     k_wih2, k_whh2, k_bih2, k_bhh2, k_fcw, k_fcb) = keys

    # Stand-in for the frozen GloVe matrix; padding_idx=0 row is zero.
    emb = jax.random.normal(k_emb, (VOCAB, EMB), jnp.float32) * 0.1
    emb = emb.at[0].set(0.0)

    bound = HIDDEN ** -0.5
    u = lambda k, s: jax.random.uniform(k, s, jnp.float32, -bound, bound)

    w_ih1 = u(k_wih1, (GATES, EMB))
    w_hh1 = u(k_whh1, (GATES, HIDDEN))
    b1 = u(k_bih1, (GATES,)) + u(k_bhh1, (GATES,))
    w_ih2 = u(k_wih2, (GATES, HIDDEN))
    w_hh2 = u(k_whh2, (GATES, HIDDEN))
    b2 = u(k_bih2, (GATES,)) + u(k_bhh2, (GATES,))
    fc_w = u(k_fcw, (VOCAB, HIDDEN))
    fc_b = u(k_fcb, (VOCAB,))

    # Fold the frozen embedding into layer-1's input projection (eval-exact).
    w_eff = emb @ w_ih1.T                               # (VOCAB, 4H)
    w_eff_pad = jnp.zeros((VOCAB_PAD, GATES), jnp.float32).at[:VOCAB].set(w_eff)

    # Block-diagonal fused recurrent weight: rows 0:H carry h1, rows H:2H
    # carry h2; columns 0:4H are layer-1 gates, 4H:8H are layer-2 gates.
    w_blk = jnp.zeros((2 * HIDDEN, 2 * GATES), jnp.float32)
    w_blk = w_blk.at[0:HIDDEN, 0:GATES].set(w_hh1.T)
    w_blk = w_blk.at[0:HIDDEN, GATES:2 * GATES].set(w_ih2.T)
    w_blk = w_blk.at[HIDDEN:2 * HIDDEN, GATES:2 * GATES].set(w_hh2.T)

    fcw_pad = jnp.zeros((HIDDEN, VOCAB_PAD), jnp.float32).at[:, :VOCAB].set(fc_w.T)
    fcb_pad = jnp.zeros((1, VOCAB_PAD), jnp.float32).at[:, :VOCAB].set(fc_b)

    return {
        "w_eff": w_eff_pad.astype(jnp.bfloat16),   # (V_pad, 4H)  bf16
        "b1": b1.reshape(1, GATES),                # (1, 4H)      f32
        "w_blk": w_blk.astype(jnp.bfloat16),       # (2H, 8H)     bf16
        "b2": b2.reshape(1, GATES),                # (1, 4H)      f32
        "fc_w": fcw_pad.astype(jnp.bfloat16),      # (H, V_pad)   bf16
        "fc_b": fcb_pad,                           # (1, V_pad)   f32
    }


# --------------------------------- forward -----------------------------------
def _fused_call(params, tok_tm, state):
    T = tok_tm.shape[0] // B_PAD
    vmem = pl.BlockSpec(memory_space=pltpu.MemorySpace.VMEM)
    # TODO(synk): at real module sizes (large vocab, H=256, L=4, long T) switch
    # the embedding to a scalar-prefetch row gather, tile T*B with a grid
    # (dimension_semantics=("parallel",) for v7x megacore), and set
    # vmem_limit_bytes; at this toy size everything fits comfortably in VMEM.
    return pl.pallas_call(
        _make_fused_kernel(T, B_PAD, HIDDEN),
        out_shape=(jax.ShapeDtypeStruct((T * B_PAD, VOCAB_PAD), jnp.float32),
                   jax.ShapeDtypeStruct((B_PAD, STATE_W), jnp.float32)),
        in_specs=[vmem] * 8,
        out_specs=(vmem, vmem),
        scratch_shapes=[pltpu.VMEM((T * B_PAD, GATES), jnp.float32),
                        pltpu.VMEM((T * B_PAD, HIDDEN), jnp.float32)],
        input_output_aliases={5: 1},   # packed state in -> packed state out
    )(tok_tm, params["w_eff"], params["b1"], params["w_blk"], params["b2"],
      state, params["fc_w"], params["fc_b"])


@jax.jit
def forward(params, x_tokens, state):
    """x_tokens: (B, T) int32 ids; state: packed (B_PAD, 4H) [h1|c1|h2|c2]."""
    B, T = x_tokens.shape
    # Padded batch rows use token 0 (pad idx); they are sliced off below and
    # never contaminate real rows (batch rows are independent).
    tok_pad = jnp.zeros((B_PAD, T), jnp.int32).at[:B].set(x_tokens.astype(jnp.int32))
    tok_tm = tok_pad.T.reshape(T * B_PAD, 1)                 # time-major ids

    logits_pad, new_state = _fused_call(params, tok_tm, state)

    # (T*B_pad, V_pad) time-major -> (B*T, V) batch-major (matches PyTorch's
    # batch_first lstm_output.reshape(-1, n_hidden) @ fc), drop padding.
    logits = (logits_pad.reshape(T, B_PAD, VOCAB_PAD)
              .transpose(1, 0, 2)[:B, :, :VOCAB]
              .reshape(B * T, VOCAB))
    return logits, new_state


def init_hidden(batch_size=BATCH):
    """Zero hidden state, kept packed & padded across calls (no per-call pad)."""
    del batch_size
    return jnp.zeros((B_PAD, STATE_W), jnp.float32)


def unpack_hidden(state, batch_size):
    """Packed (B_PAD, 4H) slab -> (h, c) each (LAYERS, B, H), PyTorch layout."""
    h = jnp.stack([state[:batch_size, 0 * HIDDEN:1 * HIDDEN],
                   state[:batch_size, 2 * HIDDEN:3 * HIDDEN]])
    c = jnp.stack([state[:batch_size, 1 * HIDDEN:2 * HIDDEN],
                   state[:batch_size, 3 * HIDDEN:4 * HIDDEN]])
    return h, c


if __name__ == "__main__":
    key = jax.random.PRNGKey(0)
    k_params, k_tok = jax.random.split(key)
    params = init_params(k_params)

    x_tokens = jax.random.randint(k_tok, (BATCH, SEQ), 0, VOCAB, dtype=jnp.int32)
    state = init_hidden(BATCH)

    out, new_state = forward(params, x_tokens, state)
    jax.block_until_ready((out, new_state))

    h_n, c_n = unpack_hidden(new_state, BATCH)
    assert out.shape == (BATCH * SEQ, VOCAB)
    assert h_n.shape == (LAYERS, BATCH, HIDDEN)
    assert c_n.shape == (LAYERS, BATCH, HIDDEN)
    assert bool(jnp.all(jnp.isfinite(out)))
    assert bool(jnp.all(jnp.isfinite(new_state)))
    print("KERNEL_OK")
</pallas_src>

<mosaic_0001>
module attributes {stable_mosaic.version = 11 : i64} {
  func.func @kernel(%arg0: memref<64x1xi32, #tpu.memory_space<vmem>>, %arg1: memref<128x128xbf16, #tpu.memory_space<vmem>>, %arg2: memref<1x128xf32, #tpu.memory_space<vmem>>, %arg3: memref<64x256xbf16, #tpu.memory_space<vmem>>, %arg4: memref<1x128xf32, #tpu.memory_space<vmem>>, %arg5: memref<8x128xf32, #tpu.memory_space<vmem>>, %arg6: memref<32x128xbf16, #tpu.memory_space<vmem>>, %arg7: memref<1x128xf32, #tpu.memory_space<vmem>>, %arg8: memref<64x128xf32, #tpu.memory_space<vmem>>, %arg9: memref<8x128xf32, #tpu.memory_space<vmem>>, %arg10: memref<64x128xf32, #tpu.memory_space<vmem>>, %arg11: memref<64x32xf32, #tpu.memory_space<vmem>>) attributes {dimension_semantics = [], scalar_prefetch = 0 : i64, scratch_operands = 2 : i64, tpu.core_type = #tpu.core_type<tc>} {
    %0 = tpu.iota {dimensions = array<i32: 1>} : vector<64x128xi32>
    %c0 = arith.constant 0 : index
    %c0_0 = arith.constant 0 : index
    %1 = vector.load %arg0[%c0, %c0_0] : memref<64x1xi32, #tpu.memory_space<vmem>>, vector<64x1xi32>
    %2 = vector.broadcast %1 : vector<64x1xi32> to vector<64x128xi32>
    %3 = arith.cmpi eq, %0, %2 : vector<64x128xi32>
    %4 = arith.extui %3 : vector<64x128xi1> to vector<64x128xi32>
    %5 = arith.sitofp %4 : vector<64x128xi32> to vector<64x128xf32>
    %6 = arith.truncf %5 : vector<64x128xf32> to vector<64x128xbf16>
    %c0_1 = arith.constant 0 : index
    %c0_2 = arith.constant 0 : index
    %7 = vector.load %arg1[%c0_1, %c0_2] : memref<128x128xbf16, #tpu.memory_space<vmem>>, vector<128x128xbf16>
    %cst = arith.constant dense<0.000000e+00> : vector<64x128xf32>
    %8 = tpu.matmul %6, %7, %cst {dimension_numbers = #tpu.dot_dimension_numbers<[1], [0], [0], [1], [0, 0, 1, 1], [], []>} : vector<64x128xbf16>, vector<128x128xbf16>, vector<64x128xf32> -> vector<64x128xf32>
    %c0_3 = arith.constant 0 : index
    %c0_4 = arith.constant 0 : index
    %9 = vector.load %arg2[%c0_3, %c0_4] : memref<1x128xf32, #tpu.memory_space<vmem>>, vector<1x128xf32>
    %10 = vector.broadcast %9 : vector<1x128xf32> to vector<64x128xf32>
    %11 = arith.addf %8, %10 : vector<64x128xf32>
    %c0_5 = arith.constant 0 : index
    %c0_6 = arith.constant 0 : index
    %12 = vector.load %arg10[%c0_5, %c0_6] : memref<64x128xf32, #tpu.memory_space<vmem>>, vector<64x128xf32>
    tpu.vector_store %arg10[%c0_5, %c0_6], %11 {strides = array<i32>} : memref<64x128xf32, #tpu.memory_space<vmem>>, vector<64x128xf32>,
    %c0_7 = arith.constant 0 : index
    %c0_8 = arith.constant 0 : index
    %13 = vector.load %arg5[%c0_7, %c0_8] : memref<8x128xf32, #tpu.memory_space<vmem>>, vector<8x128xf32>
    %14 = vector.extract_strided_slice %13 {offsets = [0, 0], sizes = [8, 32], strides = [1, 1]} : vector<8x128xf32> to vector<8x32xf32>
    %15 = vector.extract_strided_slice %13 {offsets = [0, 32], sizes = [8, 32], strides = [1, 1]} : vector<8x128xf32> to vector<8x32xf32>
    %16 = vector.extract_strided_slice %13 {offsets = [0, 64], sizes = [8, 32], strides = [1, 1]} : vector<8x128xf32> to vector<8x32xf32>
    %17 = vector.extract_strided_slice %13 {offsets = [0, 96], sizes = [8, 32], strides = [1, 1]} : vector<8x128xf32> to vector<8x32xf32>
    %c0_9 = arith.constant 0 : index
    %c0_10 = arith.constant 0 : index
    %18 = vector.load %arg3[%c0_9, %c0_10] : memref<64x256xbf16, #tpu.memory_space<vmem>>, vector<64x256xbf16>
    %c0_11 = arith.constant 0 : index
    %c0_12 = arith.constant 0 : index
    %19 = vector.load %arg4[%c0_11, %c0_12] : memref<1x128xf32, #tpu.memory_space<vmem>>, vector<1x128xf32>
    %20 = vector.shape_cast %19 : vector<1x128xf32> to vector<1x128xf32>
    %21 = vector.broadcast %20 : vector<1x128xf32> to vector<8x128xf32>
    %22 = tpu.concatenate %14, %16 in 1 : vector<8x32xf32>, vector<8x32xf32> -> vector<8x64xf32>
    %23 = arith.truncf %22 : vector<8x64xf32> to vector<8x64xbf16>
    %cst_13 = arith.constant dense<0.000000e+00> : vector<8x256xf32>
    %24 = tpu.matmul %23, %18, %cst_13 {dimension_numbers = #tpu.dot_dimension_numbers<[1], [0], [0], [1], [0, 0, 1, 1], [], []>} : vector<8x64xbf16>, vector<64x256xbf16>, vector<8x256xf32> -> vector<8x256xf32>
    %c0_14 = arith.constant 0 : index
    %c0_15 = arith.constant 0 : index
    %25 = vector.load %arg10[%c0_14, %c0_15] : memref<64x128xf32, #tpu.memory_space<vmem>>, vector<8x128xf32>
    %26 = tpu.concatenate %25, %21 in 1 : vector<8x128xf32>, vector<8x128xf32> -> vector<8x256xf32>
    %27 = arith.addf %24, %26 : vector<8x256xf32>
    %28 = arith.negf %27 : vector<8x256xf32>
    %29 = math.exp %28 : vector<8x256xf32>
    %cst_16 = arith.constant 1.000000e+00 : f32
    %30 = vector.broadcast %cst_16 : f32 to vector<8x256xf32>
    %31 = arith.addf %30, %29 : vector<8x256xf32>
    %32 = arith.divf %30, %31 : vector<8x256xf32>
    %33 = math.tanh %27 : vector<8x256xf32>
    %34 = vector.extract_strided_slice %32 {offsets = [0, 32], sizes = [8, 32], strides = [1, 1]} : vector<8x256xf32> to vector<8x32xf32>
    %35 = arith.mulf %34, %15 : vector<8x32xf32>
    %36 = vector.extract_strided_slice %32 {offsets = [0, 0], sizes = [8, 32], strides = [1, 1]} : vector<8x256xf32> to vector<8x32xf32>
    %37 = vector.extract_strided_slice %33 {offsets = [0, 64], sizes = [8, 32], strides = [1, 1]} : vector<8x256xf32> to vector<8x32xf32>
    %38 = arith.mulf %36, %37 : vector<8x32xf32>
    %39 = arith.addf %35, %38 : vector<8x32xf32>
    %40 = vector.extract_strided_slice %32 {offsets = [0, 96], sizes = [8, 32], strides = [1, 1]} : vector<8x256xf32> to vector<8x32xf32>
    %41 = math.tanh %39 : vector<8x32xf32>
    %42 = arith.mulf %40, %41 : vector<8x32xf32>
    %43 = tpu.concatenate %42, %16 in 1 : vector<8x32xf32>, vector<8x32xf32> -> vector<8x64xf32>
    %44 = arith.truncf %43 : vector<8x64xf32> to vector<8x64xbf16>
    %cst_17 = arith.constant dense<0.000000e+00> : vector<8x256xf32>
    %45 = tpu.matmul %44, %18, %cst_17 {dimension_numbers = #tpu.dot_dimension_numbers<[1], [0], [0], [1], [0, 0, 1, 1], [], []>} : vector<8x64xbf16>, vector<64x256xbf16>, vector<8x256xf32> -> vector<8x256xf32>
    %c8 = arith.constant 8 : index
    %c0_18 = arith.constant 0 : index
    %46 = vector.load %arg10[%c8, %c0_18] : memref<64x128xf32, #tpu.memory_space<vmem>>, vector<8x128xf32>
    %47 = tpu.concatenate %46, %21 in 1 : vector<8x128xf32>, vector<8x128xf32> -> vector<8x256xf32>
    %48 = arith.addf %45, %47 : vector<8x256xf32>
    %49 = arith.negf %48 : vector<8x256xf32>
    %50 = math.exp %49 : vector<8x256xf32>
    %cst_19 = arith.constant 1.000000e+00 : f32
    %51 = vector.broadcast %cst_19 : f32 to vector<8x256xf32>
    %52 = arith.addf %51, %50 : vector<8x256xf32>
    %53 = arith.divf %51, %52 : vector<8x256xf32>
    %54 = math.tanh %48 : vector<8x256xf32>
    %55 = vector.extract_strided_slice %53 {offsets = [0, 32], sizes = [8, 32], strides = [1, 1]} : vector<8x256xf32> to vector<8x32xf32>
    %56 = arith.mulf %55, %39 : vector<8x32xf32>
    %57 = vector.extract_strided_slice %53 {offsets = [0, 0], sizes = [8, 32], strides = [1, 1]} : vector<8x256xf32> to vector<8x32xf32>
    %58 = vector.extract_strided_slice %54 {offsets = [0, 64], sizes = [8, 32], strides = [1, 1]} : vector<8x256xf32> to vector<8x32xf32>
    %59 = arith.mulf %57, %58 : vector<8x32xf32>
    %60 = arith.addf %56, %59 : vector<8x32xf32>
    %61 = vector.extract_strided_slice %53 {offsets = [0, 160], sizes = [8, 32], strides = [1, 1]} : vector<8x256xf32> to vector<8x32xf32>
    %62 = arith.mulf %61, %17 : vector<8x32xf32>
    %63 = vector.extract_strided_slice %53 {offsets = [0, 128], sizes = [8, 32], strides = [1, 1]} : vector<8x256xf32> to vector<8x32xf32>
    %64 = vector.extract_strided_slice %54 {offsets = [0, 192], sizes = [8, 32], strides = [1, 1]} : vector<8x256xf32> to vector<8x32xf32>
    %65 = arith.mulf %63, %64 : vector<8x32xf32>
    %66 = arith.addf %62, %65 : vector<8x32xf32>
    %67 = tpu.concatenate %60, %66 in 1 : vector<8x32xf32>, vector<8x32xf32> -> vector<8x64xf32>
    %68 = math.tanh %67 : vector<8x64xf32>
    %69 = vector.extract_strided_slice %53 {offsets = [0, 96], sizes = [8, 32], strides = [1, 1]} : vector<8x256xf32> to vector<8x32xf32>
    %70 = vector.extract_strided_slice %68 {offsets = [0, 0], sizes = [8, 32], strides = [1, 1]} : vector<8x64xf32> to vector<8x32xf32>
    %71 = arith.mulf %69, %70 : vector<8x32xf32>
    %72 = vector.extract_strided_slice %53 {offsets = [0, 224], sizes = [8, 32], strides = [1, 1]} : vector<8x256xf32> to vector<8x32xf32>
    %73 = vector.extract_strided_slice %68 {offsets = [0, 32], sizes = [8, 32], strides = [1, 1]} : vector<8x64xf32> to vector<8x32xf32>
    %74 = arith.mulf %72, %73 : vector<8x32xf32>
    %c0_20 = arith.constant 0 : index
    %c0_21 = arith.constant 0 : index
    %75 = vector.load %arg11[%c0_20, %c0_21] : memref<64x32xf32, #tpu.memory_space<vmem>>, vector<8x32xf32>
    tpu.vector_store %arg11[%c0_20, %c0_21], %74 {strides = array<i32>} : memref<64x32xf32, #tpu.memory_space<vmem>>, vector<8x32xf32>,
    %76 = tpu.concatenate %71, %74 in 1 : vector<8x32xf32>, vector<8x32xf32> -> vector<8x64xf32>
    %77 = arith.truncf %76 : vector<8x64xf32> to vector<8x64xbf16>
    %cst_22 = arith.constant dense<0.000000e+00> : vector<8x256xf32>
    %78 = tpu.matmul %77, %18, %cst_22 {dimension_numbers = #tpu.dot_dimension_numbers<[1], [0], [0], [1], [0, 0, 1, 1], [], []>} : vector<8x64xbf16>, vector<64x256xbf16>, vector<8x256xf32> -> vector<8x256xf32>
    %c16 = arith.constant 16 : index
    %c0_23 = arith.constant 0 : index
    %79 = vector.load %arg10[%c16, %c0_23] : memref<64x128xf32, #tpu.memory_space<vmem>>, vector<8x128xf32>
    %80 = tpu.concatenate %79, %21 in 1 : vector<8x128xf32>, vector<8x128xf32> -> vector<8x256xf32>
    %81 = arith.addf %78, %80 : vector<8x256xf32>
    %82 = arith.negf %81 : vector<8x256xf32>
    %83 = math.exp %82 : vector<8x256xf32>
    %cst_24 = arith.constant 1.000000e+00 : f32
    %84 = vector.broadcast %cst_24 : f32 to vector<8x256xf32>
    %85 = arith.addf %84, %83 : vector<8x256xf32>
    %86 = arith.divf %84, %85 : vector<8x256xf32>
    %87 = math.tanh %81 : vector<8x256xf32>
    %88 = vector.extract_strided_slice %86 {offsets = [0, 32], sizes = [8, 32], strides = [1, 1]} : vector<8x256xf32> to vector<8x32xf32>
    %89 = arith.mulf %88, %60 : vector<8x32xf32>
    %90 = vector.extract_strided_slice %86 {offsets = [0, 0], sizes = [8, 32], strides = [1, 1]} : vector<8x256xf32> to vector<8x32xf32>
    %91 = vector.extract_strided_slice %87 {offsets = [0, 64], sizes = [8, 32], strides = [1, 1]} : vector<8x256xf32> to vector<8x32xf32>
    %92 = arith.mulf %90, %91 : vector<8x32xf32>
    %93 = arith.addf %89, %92 : vector<8x32xf32>
    %94 = vector.extract_strided_slice %86 {offsets = [0, 160], sizes = [8, 32], strides = [1, 1]} : vector<8x256xf32> to vector<8x32xf32>
    %95 = arith.mulf %94, %66 : vector<8x32xf32>
    %96 = vector.extract_strided_slice %86 {offsets = [0, 128], sizes = [8, 32], strides = [1, 1]} : vector<8x256xf32> to vector<8x32xf32>
    %97 = vector.extract_strided_slice %87 {offsets = [0, 192], sizes = [8, 32], strides = [1, 1]} : vector<8x256xf32> to vector<8x32xf32>
    %98 = arith.mulf %96, %97 : vector<8x32xf32>
    %99 = arith.addf %95, %98 : vector<8x32xf32>
    %100 = tpu.concatenate %93, %99 in 1 : vector<8x32xf32>, vector<8x32xf32> -> vector<8x64xf32>
    %101 = math.tanh %100 : vector<8x64xf32>
    %102 = vector.extract_strided_slice %86 {offsets = [0, 96], sizes = [8, 32], strides = [1, 1]} : vector<8x256xf32> to vector<8x32xf32>
    %103 = vector.extract_strided_slice %101 {offsets = [0, 0], sizes = [8, 32], strides = [1, 1]} : vector<8x64xf32> to vector<8x32xf32>
    %104 = arith.mulf %102, %103 : vector<8x32xf32>
    %105 = vector.extract_strided_slice %86 {offsets = [0, 224], sizes = [8, 32], strides = [1, 1]} : vector<8x256xf32> to vector<8x32xf32>
    %106 = vector.extract_strided_slice %101 {offsets = [0, 32], sizes = [8, 32], strides = [1, 1]} : vector<8x64xf32> to vector<8x32xf32>
    %107 = arith.mulf %105, %106 : vector<8x32xf32>
    %c8_25 = arith.constant 8 : index
    %c0_26 = arith.constant 0 : index
    %108 = vector.load %arg11[%c8_25, %c0_26] : memref<64x32xf32, #tpu.memory_space<vmem>>, vector<8x32xf32>
    tpu.vector_store %arg11[%c8_25, %c0_26], %107 {strides = array<i32>} : memref<64x32xf32, #tpu.memory_space<vmem>>, vector<8x32xf32>,
    %109 = tpu.concatenate %104, %107 in 1 : vector<8x32xf32>, vector<8x32xf32> -> vector<8x64xf32>
    %110 = arith.truncf %109 : vector<8x64xf32> to vector<8x64xbf16>
    %cst_27 = arith.constant dense<0.000000e+00> : vector<8x256xf32>
    %111 = tpu.matmul %110, %18, %cst_27 {dimension_numbers = #tpu.dot_dimension_numbers<[1], [0], [0], [1], [0, 0, 1, 1], [], []>} : vector<8x64xbf16>, vector<64x256xbf16>, vector<8x256xf32> -> vector<8x256xf32>
    %c24 = arith.constant 24 : index
    %c0_28 = arith.constant 0 : index
    %112 = vector.load %arg10[%c24, %c0_28] : memref<64x128xf32, #tpu.memory_space<vmem>>, vector<8x128xf32>
    %113 = tpu.concatenate %112, %21 in 1 : vector<8x128xf32>, vector<8x128xf32> -> vector<8x256xf32>
    %114 = arith.addf %111, %113 : vector<8x256xf32>
    %115 = arith.negf %114 : vector<8x256xf32>
    %116 = math.exp %115 : vector<8x256xf32>
    %cst_29 = arith.constant 1.000000e+00 : f32
    %117 = vector.broadcast %cst_29 : f32 to vector<8x256xf32>
    %118 = arith.addf %117, %116 : vector<8x256xf32>
    %119 = arith.divf %117, %118 : vector<8x256xf32>
    %120 = math.tanh %114 : vector<8x256xf32>
    %121 = vector.extract_strided_slice %119 {offsets = [0, 32], sizes = [8, 32], strides = [1, 1]} : vector<8x256xf32> to vector<8x32xf32>
    %122 = arith.mulf %121, %93 : vector<8x32xf32>
    %123 = vector.extract_strided_slice %119 {offsets = [0, 0], sizes = [8, 32], strides = [1, 1]} : vector<8x256xf32> to vector<8x32xf32>
    %124 = vector.extract_strided_slice %120 {offsets = [0, 64], sizes = [8, 32], strides = [1, 1]} : vector<8x256xf32> to vector<8x32xf32>
    %125 = arith.mulf %123, %124 : vector<8x32xf32>
    %126 = arith.addf %122, %125 : vector<8x32xf32>
    %127 = vector.extract_strided_slice %119 {offsets = [0, 160], sizes = [8, 32], strides = [1, 1]} : vector<8x256xf32> to vector<8x32xf32>
    %128 = arith.mulf %127, %99 : vector<8x32xf32>
    %129 = vector.extract_strided_slice %119 {offsets = [0, 128], sizes = [8, 32], strides = [1, 1]} : vector<8x256xf32> to vector<8x32xf32>
    %130 = vector.extract_strided_slice %120 {offsets = [0, 192], sizes = [8, 32], strides = [1, 1]} : vector<8x256xf32> to vector<8x32xf32>
    %131 = arith.mulf %129, %130 : vector<8x32xf32>
    %132 = arith.addf %128, %131 : vector<8x32xf32>
    %133 = tpu.concatenate %126, %132 in 1 : vector<8x32xf32>, vector<8x32xf32> -> vector<8x64xf32>
    %134 = math.tanh %133 : vector<8x64xf32>
    %135 = vector.extract_strided_slice %119 {offsets = [0, 96], sizes = [8, 32], strides = [1, 1]} : vector<8x256xf32> to vector<8x32xf32>
    %136 = vector.extract_strided_slice %134 {offsets = [0, 0], sizes = [8, 32], strides = [1, 1]} : vector<8x64xf32> to vector<8x32xf32>
    %137 = arith.mulf %135, %136 : vector<8x32xf32>
    %138 = vector.extract_strided_slice %119 {offsets = [0, 224], sizes = [8, 32], strides = [1, 1]} : vector<8x256xf32> to vector<8x32xf32>
    %139 = vector.extract_strided_slice %134 {offsets = [0, 32], sizes = [8, 32], strides = [1, 1]} : vector<8x64xf32> to vector<8x32xf32>
    %140 = arith.mulf %138, %139 : vector<8x32xf32>
    %c16_30 = arith.constant 16 : index
    %c0_31 = arith.constant 0 : index
    %141 = vector.load %arg11[%c16_30, %c0_31] : memref<64x32xf32, #tpu.memory_space<vmem>>, vector<8x32xf32>
    tpu.vector_store %arg11[%c16_30, %c0_31], %140 {strides = array<i32>} : memref<64x32xf32, #tpu.memory_space<vmem>>, vector<8x32xf32>,
    %142 = tpu.concatenate %137, %140 in 1 : vector<8x32xf32>, vector<8x32xf32> -> vector<8x64xf32>
    %143 = arith.truncf %142 : vector<8x64xf32> to vector<8x64xbf16>
    %cst_32 = arith.constant dense<0.000000e+00> : vector<8x256xf32>
    %144 = tpu.matmul %143, %18, %cst_32 {dimension_numbers = #tpu.dot_dimension_numbers<[1], [0], [0], [1], [0, 0, 1, 1], [], []>} : vector<8x64xbf16>, vector<64x256xbf16>, vector<8x256xf32> -> vector<8x256xf32>
    %c32 = arith.constant 32 : index
    %c0_33 = arith.constant 0 : index
    %145 = vector.load %arg10[%c32, %c0_33] : memref<64x128xf32, #tpu.memory_space<vmem>>, vector<8x128xf32>
    %146 = tpu.concatenate %145, %21 in 1 : vector<8x128xf32>, vector<8x128xf32> -> vector<8x256xf32>
    %147 = arith.addf %144, %146 : vector<8x256xf32>
    %148 = arith.negf %147 : vector<8x256xf32>
    %149 = math.exp %148 : vector<8x256xf32>
    %cst_34 = arith.constant 1.000000e+00 : f32
    %150 = vector.broadcast %cst_34 : f32 to vector<8x256xf32>
    %151 = arith.addf %150, %149 : vector<8x256xf32>
    %152 = arith.divf %150, %151 : vector<8x256xf32>
    %153 = math.tanh %147 : vector<8x256xf32>
    %154 = vector.extract_strided_slice %152 {offsets = [0, 32], sizes = [8, 32], strides = [1, 1]} : vector<8x256xf32> to vector<8x32xf32>
    %155 = arith.mulf %154, %126 : vector<8x32xf32>
    %156 = vector.extract_strided_slice %152 {offsets = [0, 0], sizes = [8, 32], strides = [1, 1]} : vector<8x256xf32> to vector<8x32xf32>
    %157 = vector.extract_strided_slice %153 {offsets = [0, 64], sizes = [8, 32], strides = [1, 1]} : vector<8x256xf32> to vector<8x32xf32>
    %158 = arith.mulf %156, %157 : vector<8x32xf32>
    %159 = arith.addf %155, %158 : vector<8x32xf32>
    %160 = vector.extract_strided_slice %152 {offsets = [0, 160], sizes = [8, 32], strides = [1, 1]} : vector<8x256xf32> to vector<8x32xf32>
    %161 = arith.mulf %160, %132 : vector<8x32xf32>
    %162 = vector.extract_strided_slice %152 {offsets = [0, 128], sizes = [8, 32], strides = [1, 1]} : vector<8x256xf32> to vector<8x32xf32>
    %163 = vector.extract_strided_slice %153 {offsets = [0, 192], sizes = [8, 32], strides = [1, 1]} : vector<8x256xf32> to vector<8x32xf32>
    %164 = arith.mulf %162, %163 : vector<8x32xf32>
    %165 = arith.addf %161, %164 : vector<8x32xf32>
    %166 = tpu.concatenate %159, %165 in 1 : vector<8x32xf32>, vector<8x32xf32> -> vector<8x64xf32>
    %167 = math.tanh %166 : vector<8x64xf32>
    %168 = vector.extract_strided_slice %152 {offsets = [0, 96], sizes = [8, 32], strides = [1, 1]} : vector<8x256xf32> to vector<8x32xf32>
    %169 = vector.extract_strided_slice %167 {offsets = [0, 0], sizes = [8, 32], strides = [1, 1]} : vector<8x64xf32> to vector<8x32xf32>
    %170 = arith.mulf %168, %169 : vector<8x32xf32>
    %171 = vector.extract_strided_slice %152 {offsets = [0, 224], sizes = [8, 32], strides = [1, 1]} : vector<8x256xf32> to vector<8x32xf32>
    %172 = vector.extract_strided_slice %167 {offsets = [0, 32], sizes = [8, 32], strides = [1, 1]} : vector<8x64xf32> to vector<8x32xf32>
    %173 = arith.mulf %171, %172 : vector<8x32xf32>
    %c24_35 = arith.constant 24 : index
    %c0_36 = arith.constant 0 : index
    %174 = vector.load %arg11[%c24_35, %c0_36] : memref<64x32xf32, #tpu.memory_space<vmem>>, vector<8x32xf32>
    tpu.vector_store %arg11[%c24_35, %c0_36], %173 {strides = array<i32>} : memref<64x32xf32, #tpu.memory_space<vmem>>, vector<8x32xf32>,
    %175 = tpu.concatenate %170, %173 in 1 : vector<8x32xf32>, vector<8x32xf32> -> vector<8x64xf32>
    %176 = arith.truncf %175 : vector<8x64xf32> to vector<8x64xbf16>
    %cst_37 = arith.constant dense<0.000000e+00> : vector<8x256xf32>
    %177 = tpu.matmul %176, %18, %cst_37 {dimension_numbers = #tpu.dot_dimension_numbers<[1], [0], [0], [1], [0, 0, 1, 1], [], []>} : vector<8x64xbf16>, vector<64x256xbf16>, vector<8x256xf32> -> vector<8x256xf32>
    %c40 = arith.constant 40 : index
    %c0_38 = arith.constant 0 : index
    %178 = vector.load %arg10[%c40, %c0_38] : memref<64x128xf32, #tpu.memory_space<vmem>>, vector<8x128xf32>
    %179 = tpu.concatenate %178, %21 in 1 : vector<8x128xf32>, vector<8x128xf32> -> vector<8x256xf32>
    %180 = arith.addf %177, %179 : vector<8x256xf32>
    %181 = arith.negf %180 : vector<8x256xf32>
    %182 = math.exp %181 : vector<8x256xf32>
    %cst_39 = arith.constant 1.000000e+00 : f32
    %183 = vector.broadcast %cst_39 : f32 to vector<8x256xf32>
    %184 = arith.addf %183, %182 : vector<8x256xf32>
    %185 = arith.divf %183, %184 : vector<8x256xf32>
    %186 = math.tanh %180 : vector<8x256xf32>
    %187 = vector.extract_strided_slice %185 {offsets = [0, 32], sizes = [8, 32], strides = [1, 1]} : vector<8x256xf32> to vector<8x32xf32>
    %188 = arith.mulf %187, %159 : vector<8x32xf32>
    %189 = vector.extract_strided_slice %185 {offsets = [0, 0], sizes = [8, 32], strides = [1, 1]} : vector<8x256xf32> to vector<8x32xf32>
    %190 = vector.extract_strided_slice %186 {offsets = [0, 64], sizes = [8, 32], strides = [1, 1]} : vector<8x256xf32> to vector<8x32xf32>
    %191 = arith.mulf %189, %190 : vector<8x32xf32>
    %192 = arith.addf %188, %191 : vector<8x32xf32>
    %193 = vector.extract_strided_slice %185 {offsets = [0, 160], sizes = [8, 32], strides = [1, 1]} : vector<8x256xf32> to vector<8x32xf32>
    %194 = arith.mulf %193, %165 : vector<8x32xf32>
    %195 = vector.extract_strided_slice %185 {offsets = [0, 128], sizes = [8, 32], strides = [1, 1]} : vector<8x256xf32> to vector<8x32xf32>
    %196 = vector.extract_strided_slice %186 {offsets = [0, 192], sizes = [8, 32], strides = [1, 1]} : vector<8x256xf32> to vector<8x32xf32>
    %197 = arith.mulf %195, %196 : vector<8x32xf32>
    %198 = arith.addf %194, %197 : vector<8x32xf32>
    %199 = tpu.concatenate %192, %198 in 1 : vector<8x32xf32>, vector<8x32xf32> -> vector<8x64xf32>
    %200 = math.tanh %199 : vector<8x64xf32>
    %201 = vector.extract_strided_slice %185 {offsets = [0, 96], sizes = [8, 32], strides = [1, 1]} : vector<8x256xf32> to vector<8x32xf32>
    %202 = vector.extract_strided_slice %200 {offsets = [0, 0], sizes = [8, 32], strides = [1, 1]} : vector<8x64xf32> to vector<8x32xf32>
    %203 = arith.mulf %201, %202 : vector<8x32xf32>
    %204 = vector.extract_strided_slice %185 {offsets = [0, 224], sizes = [8, 32], strides = [1, 1]} : vector<8x256xf32> to vector<8x32xf32>
    %205 = vector.extract_strided_slice %200 {offsets = [0, 32], sizes = [8, 32], strides = [1, 1]} : vector<8x64xf32> to vector<8x32xf32>
    %206 = arith.mulf %204, %205 : vector<8x32xf32>
    %c32_40 = arith.constant 32 : index
    %c0_41 = arith.constant 0 : index
    %207 = vector.load %arg11[%c32_40, %c0_41] : memref<64x32xf32, #tpu.memory_space<vmem>>, vector<8x32xf32>
    tpu.vector_store %arg11[%c32_40, %c0_41], %206 {strides = array<i32>} : memref<64x32xf32, #tpu.memory_space<vmem>>, vector<8x32xf32>,
    %208 = tpu.concatenate %203, %206 in 1 : vector<8x32xf32>, vector<8x32xf32> -> vector<8x64xf32>
    %209 = arith.truncf %208 : vector<8x64xf32> to vector<8x64xbf16>
    %cst_42 = arith.constant dense<0.000000e+00> : vector<8x256xf32>
    %210 = tpu.matmul %209, %18, %cst_42 {dimension_numbers = #tpu.dot_dimension_numbers<[1], [0], [0], [1], [0, 0, 1, 1], [], []>} : vector<8x64xbf16>, vector<64x256xbf16>, vector<8x256xf32> -> vector<8x256xf32>
    %c48 = arith.constant 48 : index
    %c0_43 = arith.constant 0 : index
    %211 = vector.load %arg10[%c48, %c0_43] : memref<64x128xf32, #tpu.memory_space<vmem>>, vector<8x128xf32>
    %212 = tpu.concatenate %211, %21 in 1 : vector<8x128xf32>, vector<8x128xf32> -> vector<8x256xf32>
    %213 = arith.addf %210, %212 : vector<8x256xf32>
    %214 = arith.negf %213 : vector<8x256xf32>
    %215 = math.exp %214 : vector<8x256xf32>
    %cst_44 = arith.constant 1.000000e+00 : f32
    %216 = vector.broadcast %cst_44 : f32 to vector<8x256xf32>
    %217 = arith.addf %216, %215 : vector<8x256xf32>
    %218 = arith.divf %216, %217 : vector<8x256xf32>
    %219 = math.tanh %213 : vector<8x256xf32>
    %220 = vector.extract_strided_slice %218 {offsets = [0, 32], sizes = [8, 32], strides = [1, 1]} : vector<8x256xf32> to vector<8x32xf32>
    %221 = arith.mulf %220, %192 : vector<8x32xf32>
    %222 = vector.extract_strided_slice %218 {offsets = [0, 0], sizes = [8, 32], strides = [1, 1]} : vector<8x256xf32> to vector<8x32xf32>
    %223 = vector.extract_strided_slice %219 {offsets = [0, 64], sizes = [8, 32], strides = [1, 1]} : vector<8x256xf32> to vector<8x32xf32>
    %224 = arith.mulf %222, %223 : vector<8x32xf32>
    %225 = arith.addf %221, %224 : vector<8x32xf32>
    %226 = vector.extract_strided_slice %218 {offsets = [0, 160], sizes = [8, 32], strides = [1, 1]} : vector<8x256xf32> to vector<8x32xf32>
    %227 = arith.mulf %226, %198 : vector<8x32xf32>
    %228 = vector.extract_strided_slice %218 {offsets = [0, 128], sizes = [8, 32], strides = [1, 1]} : vector<8x256xf32> to vector<8x32xf32>
    %229 = vector.extract_strided_slice %219 {offsets = [0, 192], sizes = [8, 32], strides = [1, 1]} : vector<8x256xf32> to vector<8x32xf32>
    %230 = arith.mulf %228, %229 : vector<8x32xf32>
    %231 = arith.addf %227, %230 : vector<8x32xf32>
    %232 = tpu.concatenate %225, %231 in 1 : vector<8x32xf32>, vector<8x32xf32> -> vector<8x64xf32>
    %233 = math.tanh %232 : vector<8x64xf32>
    %234 = vector.extract_strided_slice %218 {offsets = [0, 96], sizes = [8, 32], strides = [1, 1]} : vector<8x256xf32> to vector<8x32xf32>
    %235 = vector.extract_strided_slice %233 {offsets = [0, 0], sizes = [8, 32], strides = [1, 1]} : vector<8x64xf32> to vector<8x32xf32>
    %236 = arith.mulf %234, %235 : vector<8x32xf32>
    %237 = vector.extract_strided_slice %218 {offsets = [0, 224], sizes = [8, 32], strides = [1, 1]} : vector<8x256xf32> to vector<8x32xf32>
    %238 = vector.extract_strided_slice %233 {offsets = [0, 32], sizes = [8, 32], strides = [1, 1]} : vector<8x64xf32> to vector<8x32xf32>
    %239 = arith.mulf %237, %238 : vector<8x32xf32>
    %c40_45 = arith.constant 40 : index
    %c0_46 = arith.constant 0 : index
    %240 = vector.load %arg11[%c40_45, %c0_46] : memref<64x32xf32, #tpu.memory_space<vmem>>, vector<8x32xf32>
    tpu.vector_store %arg11[%c40_45, %c0_46], %239 {strides = array<i32>} : memref<64x32xf32, #tpu.memory_space<vmem>>, vector<8x32xf32>,
    %241 = tpu.concatenate %236, %239 in 1 : vector<8x32xf32>, vector<8x32xf32> -> vector<8x64xf32>
    %242 = arith.truncf %241 : vector<8x64xf32> to vector<8x64xbf16>
    %cst_47 = arith.constant dense<0.000000e+00> : vector<8x256xf32>
    %243 = tpu.matmul %242, %18, %cst_47 {dimension_numbers = #tpu.dot_dimension_numbers<[1], [0], [0], [1], [0, 0, 1, 1], [], []>} : vector<8x64xbf16>, vector<64x256xbf16>, vector<8x256xf32> -> vector<8x256xf32>
    %c56 = arith.constant 56 : index
    %c0_48 = arith.constant 0 : index
    %244 = vector.load %arg10[%c56, %c0_48] : memref<64x128xf32, #tpu.memory_space<vmem>>, vector<8x128xf32>
    %245 = tpu.concatenate %244, %21 in 1 : vector<8x128xf32>, vector<8x128xf32> -> vector<8x256xf32>
    %246 = arith.addf %243, %245 : vector<8x256xf32>
    %247 = arith.negf %246 : vector<8x256xf32>
    %248 = math.exp %247 : vector<8x256xf32>
    %cst_49 = arith.constant 1.000000e+00 : f32
    %249 = vector.broadcast %cst_49 : f32 to vector<8x256xf32>
    %250 = arith.addf %249, %248 : vector<8x256xf32>
    %251 = arith.divf %249, %250 : vector<8x256xf32>
    %252 = math.tanh %246 : vector<8x256xf32>
    %253 = vector.extract_strided_slice %251 {offsets = [0, 32], sizes = [8, 32], strides = [1, 1]} : vector<8x256xf32> to vector<8x32xf32>
    %254 = arith.mulf %253, %225 : vector<8x32xf32>
    %255 = vector.extract_strided_slice %251 {offsets = [0, 0], sizes = [8, 32], strides = [1, 1]} : vector<8x256xf32> to vector<8x32xf32>
    %256 = vector.extract_strided_slice %252 {offsets = [0, 64], sizes = [8, 32], strides = [1, 1]} : vector<8x256xf32> to vector<8x32xf32>
    %257 = arith.mulf %255, %256 : vector<8x32xf32>
    %258 = arith.addf %254, %257 : vector<8x32xf32>
    %259 = vector.extract_strided_slice %251 {offsets = [0, 160], sizes = [8, 32], strides = [1, 1]} : vector<8x256xf32> to vector<8x32xf32>
    %260 = arith.mulf %259, %231 : vector<8x32xf32>
    %261 = vector.extract_strided_slice %251 {offsets = [0, 128], sizes = [8, 32], strides = [1, 1]} : vector<8x256xf32> to vector<8x32xf32>
    %262 = vector.extract_strided_slice %252 {offsets = [0, 192], sizes = [8, 32], strides = [1, 1]} : vector<8x256xf32> to vector<8x32xf32>
    %263 = arith.mulf %261, %262 : vector<8x32xf32>
    %264 = arith.addf %260, %263 : vector<8x32xf32>
    %265 = tpu.concatenate %258, %264 in 1 : vector<8x32xf32>, vector<8x32xf32> -> vector<8x64xf32>
    %266 = math.tanh %265 : vector<8x64xf32>
    %267 = vector.extract_strided_slice %251 {offsets = [0, 96], sizes = [8, 32], strides = [1, 1]} : vector<8x256xf32> to vector<8x32xf32>
    %268 = vector.extract_strided_slice %266 {offsets = [0, 0], sizes = [8, 32], strides = [1, 1]} : vector<8x64xf32> to vector<8x32xf32>
    %269 = arith.mulf %267, %268 : vector<8x32xf32>
    %270 = vector.extract_strided_slice %251 {offsets = [0, 224], sizes = [8, 32], strides = [1, 1]} : vector<8x256xf32> to vector<8x32xf32>
    %271 = vector.extract_strided_slice %266 {offsets = [0, 32], sizes = [8, 32], strides = [1, 1]} : vector<8x64xf32> to vector<8x32xf32>
    %272 = arith.mulf %270, %271 : vector<8x32xf32>
    %c48_50 = arith.constant 48 : index
    %c0_51 = arith.constant 0 : index
    %273 = vector.load %arg11[%c48_50, %c0_51] : memref<64x32xf32, #tpu.memory_space<vmem>>, vector<8x32xf32>
    tpu.vector_store %arg11[%c48_50, %c0_51], %272 {strides = array<i32>} : memref<64x32xf32, #tpu.memory_space<vmem>>, vector<8x32xf32>,
    %274 = tpu.concatenate %269, %272 in 1 : vector<8x32xf32>, vector<8x32xf32> -> vector<8x64xf32>
    %275 = arith.truncf %274 : vector<8x64xf32> to vector<8x64xbf16>
    %cst_52 = arith.constant dense<0.000000e+00> : vector<8x256xf32>
    %276 = tpu.matmul %275, %18, %cst_52 {dimension_numbers = #tpu.dot_dimension_numbers<[1], [0], [0], [1], [0, 0, 1, 1], [], []>} : vector<8x64xbf16>, vector<64x256xbf16>, vector<8x256xf32> -> vector<8x256xf32>
    %c56_53 = arith.constant 56 : index
    %c0_54 = arith.constant 0 : index
    %277 = vector.load %arg10[%c56_53, %c0_54] : memref<64x128xf32, #tpu.memory_space<vmem>>, vector<8x128xf32>
    %278 = tpu.concatenate %277, %21 in 1 : vector<8x128xf32>, vector<8x128xf32> -> vector<8x256xf32>
    %279 = arith.addf %276, %278 : vector<8x256xf32>
    %280 = arith.negf %279 : vector<8x256xf32>
    %281 = math.exp %280 : vector<8x256xf32>
    %cst_55 = arith.constant 1.000000e+00 : f32
    %282 = vector.broadcast %cst_55 : f32 to vector<8x256xf32>
    %283 = arith.addf %282, %281 : vector<8x256xf32>
    %284 = arith.divf %282, %283 : vector<8x256xf32>
    %285 = math.tanh %279 : vector<8x256xf32>
    %286 = vector.extract_strided_slice %284 {offsets = [0, 160], sizes = [8, 32], strides = [1, 1]} : vector<8x256xf32> to vector<8x32xf32>
    %287 = arith.mulf %286, %264 : vector<8x32xf32>
    %288 = vector.extract_strided_slice %284 {offsets = [0, 128], sizes = [8, 32], strides = [1, 1]} : vector<8x256xf32> to vector<8x32xf32>
    %289 = vector.extract_strided_slice %285 {offsets = [0, 192], sizes = [8, 32], strides = [1, 1]} : vector<8x256xf32> to vector<8x32xf32>
    %290 = arith.mulf %288, %289 : vector<8x32xf32>
    %291 = arith.addf %287, %290 : vector<8x32xf32>
    %292 = vector.extract_strided_slice %284 {offsets = [0, 224], sizes = [8, 32], strides = [1, 1]} : vector<8x256xf32> to vector<8x32xf32>
    %293 = math.tanh %291 : vector<8x32xf32>
    %294 = arith.mulf %292, %293 : vector<8x32xf32>
    %c56_56 = arith.constant 56 : index
    %c0_57 = arith.constant 0 : index
    %295 = vector.load %arg11[%c56_56, %c0_57] : memref<64x32xf32, #tpu.memory_space<vmem>>, vector<8x32xf32>
    tpu.vector_store %arg11[%c56_56, %c0_57], %294 {strides = array<i32>} : memref<64x32xf32, #tpu.memory_space<vmem>>, vector<8x32xf32>,
    %296 = tpu.concatenate %269, %258, %294, %291 in 1 : vector<8x32xf32>, vector<8x32xf32>, vector<8x32xf32>, vector<8x32xf32> -> vector<8x128xf32>
    %c0_58 = arith.constant 0 : index
    %c0_59 = arith.constant 0 : index
    %297 = vector.load %arg9[%c0_58, %c0_59] : memref<8x128xf32, #tpu.memory_space<vmem>>, vector<8x128xf32>
    tpu.vector_store %arg9[%c0_58, %c0_59], %296 {strides = array<i32>} : memref<8x128xf32, #tpu.memory_space<vmem>>, vector<8x128xf32>,
    %c0_60 = arith.constant 0 : index
    %c0_61 = arith.constant 0 : index
    %298 = vector.load %arg11[%c0_60, %c0_61] : memref<64x32xf32, #tpu.memory_space<vmem>>, vector<64x32xf32>
    %299 = arith.truncf %298 : vector<64x32xf32> to vector<64x32xbf16>
    %c0_62 = arith.constant 0 : index
    %c0_63 = arith.constant 0 : index
    %300 = vector.load %arg6[%c0_62, %c0_63] : memref<32x128xbf16, #tpu.memory_space<vmem>>, vector<32x128xbf16>
    %cst_64 = arith.constant dense<0.000000e+00> : vector<64x128xf32>
    %301 = tpu.matmul %299, %300, %cst_64 {dimension_numbers = #tpu.dot_dimension_numbers<[1], [0], [0], [1], [0, 0, 1, 1], [], []>} : vector<64x32xbf16>, vector<32x128xbf16>, vector<64x128xf32> -> vector<64x128xf32>
    %c0_65 = arith.constant 0 : index
    %c0_66 = arith.constant 0 : index
    %302 = vector.load %arg7[%c0_65, %c0_66] : memref<1x128xf32, #tpu.memory_space<vmem>>, vector<1x128xf32>
    %303 = vector.broadcast %302 : vector<1x128xf32> to vector<64x128xf32>
    %304 = arith.addf %301, %303 : vector<64x128xf32>
    %c0_67 = arith.constant 0 : index
    %c0_68 = arith.constant 0 : index
    %305 = vector.load %arg8[%c0_67, %c0_68] : memref<64x128xf32, #tpu.memory_space<vmem>>, vector<64x128xf32>
    tpu.vector_store %arg8[%c0_67, %c0_68], %304 {strides = array<i32>} : memref<64x128xf32, #tpu.memory_space<vmem>>, vector<64x128xf32>,
    return
  }
}

</mosaic_0001>

<bundles_post_ra>
// kernel: forward.1
= control target key start
LH: loop header
LB: loop body
LE: loop exit
PB: predicated region body
PF: predicated region fallthrough
CT: control target
= control target key end

     0   :  { %15 = vsyncpa [#allocation5], 0  ;;  %s1666_s30 = smov [#allocation4]   ;;  %s2155_s0 = inlined_call_operand.vmem [shape: s32[64,1], index: 0, kind: input, shape index: {}]   ;;  %s2156_s1 = inlined_call_operand.vmem [shape: bf16[128,128], index: 1, kind: input, shape index: {}]   ;;  %s2157_s2 = inlined_call_operand.vmem [shape: f32[1,128], index: 2, kind: input, shape index: {}]   ;;  %s2158_s3 = inlined_call_operand.hbm [shape: bf16[64,256], index: 3, kind: input, shape index: {}]   ;;  %s2159_s4 = inlined_call_operand.vmem [shape: f32[1,128], index: 4, kind: input, shape index: {}]   ;;  %s2160_s5 = inlined_call_operand.vmem [shape: f32[8,128], index: 5, kind: input, shape index: {}, may-alias: {5,9}]   ;;  %s2161_s6 = inlined_call_operand.vmem [shape: bf16[32,128], index: 6, kind: input, shape index: {}]   ;;  %s2162_s7 = inlined_call_operand.vmem [shape: f32[1,128], index: 7, kind: input, shape index: {}]   ;;  %s2163_s8 = inlined_call_operand.vmem [shape: f32[64,128], index: 8, kind: output, shape index: {0}]   ;;  %s2164_s9 = inlined_call_operand.vmem [shape: f32[8,128], index: 9, kind: output, shape index: {1}, may-alias: {5,9}]  }
   0x1   :  { %s27_s10 = sshll.u32 %s1666_s30, 4  ;;  %s1642_s13 = scalar_lea.hbm %s2158_s3, 1024  ;;  %s28_s10 = int_to_ptr.vmem [resolvable:$true] %s27_s10 }
   0x2   :  { %p1643_p0 = scmp.ne.s32.totalorder %s2158_s3, %s1642_s13  ;;  %p1646_p1 = scmp.lt.u32.totalorder %s1642_s13, %s2158_s3 }
   0x4   :  { %p1648_p2 = pnand %p1646_p1, %p1643_p0 }
   0x6   :  { %1651 = shalt.err (!%p1648_p2)
}
   0x7   :  { %s1652_s18 = scalar_lea.vmem %s28_s10, 1024  ;;  %p1657_p4 = scmp.lt.s32.totalorder %s28_s10, %s28_s10 }
   0x8   :  { %p1653_p3 = scmp.ne.s32.totalorder %s28_s10, %s1652_s18  ;;  %p1658_p5 = scmp.lt.s32.totalorder %s1652_s18, %s1652_s18 }
   0xa   :  { %p1659_p6 = por %p1658_p5, %p1657_p4 }
   0xc   :  { %p1660_p7 = pnand %p1659_p6, %p1653_p3 }
   0xe   :  { %1663 = shalt.err (!%p1660_p7)
}
   0xf   :  { %s1667_s19 = smov 128   ;;  %s1668_s20 = smov 8  }
  0x10   :  { %33 = dma.hbm_to_vmem [thread:$0]  %s2158_s3, 1024, %s28_s10, [#allocation5], %s1667_s19, %s1667_s19, %s1668_s20  }
  0x11   :  { %1664 = dma.done.wait [#allocation5], 1024  }
  0x12   :  { %1665 = vsyncadd [#allocation5], 4294966272  ;;  %v1669_v0 = vmov 0   ;;  %v50_v1 = vld [vmem:[%s2155_s0 + $0x10] sm:$0xff]  ;;  %v48_v2 = vld [vmem:[%s2155_s0] sm:$0xff]  ;;  %s1670_s17 = smov 96   ;;  %v46_v22 = vlaneseq }
  0x13   :  { %1505 = vset.pattern.permute.xlu1 %v1669_v0  ;;  %1504 = vset.pattern.permute.xlu0 %v1669_v0  ;;  %v51_v3 = vld [vmem:[%s2155_s0 + $0x18] sm:$0xff]  ;;  %v49_v4 = vld [vmem:[%s2155_s0 + $0x8] sm:$0xff]  ;;  %v1506_v5 = vld [vmem:[%s2156_s1] sm:$0xff]   ;;  %vm272_vm5 = vcmask 261120   ;;  %v1671_v28 = vmov 1.0|1.0  }
  0x14   :  { %352 = vmatprep.mubr.bf16.mxu1 %v1669_v0  ;;  %63 = vperm.xlu1 %1505, %v50_v1   ;;  %v1507_v6 = vld [vmem:[%s2156_s1 + $0x8] sm:$0xff]   ;;  %v1760_v7 = vld [vmem:[%s2160_s5] sm:$0xff]  ;;  %v1508_v8 = vld [vmem:[%s2156_s1 + $0x10] sm:$0xff]   ;;  %v1808_v25 = vand.u32 127, %v46_v22  ;;  %vm316_vm7 = vcmask 523264   ;;  %s1672_s27 = smov 64  }
  0x15   :  { %57 = vperm.xlu0 %1504, %v48_v2   ;;  %1460 = vmatprep.subr.bf16.mxu0 %v1506_v5  ;;  %v1765_v9 = vld [vmem:[#allocation4 + $0x4] ss:$8 sps:$4 sm:$0xff]   ;;  %v1767_v10 = vld [vmem:[#allocation4] ss:$8 sps:$4 sm:$0xff]   ;;  %v1509_v11 = vld [vmem:[%s2156_s1 + $0x18] sm:$0xff]   ;;  %vm1244_vm14 = vcmask 785408  }
  0x16   :  { %1461 = vmatpush3.bf16.msra.mxu0 %v1506_v5  ;;  %320 = vmatprep.subr.bf16.mxu1 %v1765_v9  ;;  %v1775_v12 = vld [vmem:[#allocation4 + $0x14] ss:$8 sps:$4 sm:$0xff]   ;;  %v1778_v13 = vld [vmem:[#allocation4 + $0x10] ss:$8 sps:$4 sm:$0xff]   ;;  %v1781_v14 = vld [vmem:[#allocation4 + $0x24] ss:$8 sps:$4 sm:$0xff]  }
  0x17   :  { %1462 = vmatprep.subr.bf16.mxu0 %v1507_v6  ;;  %321 = vmatpush1.bf16.msra.mxu1 %v1767_v10  ;;  %v1510_v15 = vld [vmem:[%s2156_s1 + $0x20] sm:$0xff]   ;;  %v1790_v17 = vld [vmem:[#allocation4 + $0x34] ss:$8 sps:$4 sm:$0xff]   ;;  %v1511_v18 = vld [vmem:[%s2156_s1 + $0x28] sm:$0xff]  }
  0x18   :  { %66 = vperm.xlu1 %1505, %v51_v3   ;;  %322 = vmatprep.subr.bf16.mxu1 %v1775_v12  ;;  %v1786_v16 = vld [vmem:[#allocation4 + $0x20] ss:$8 sps:$4 sm:$0xff]   ;;  %v1796_v19 = vld [vmem:[#allocation4 + $0x30] ss:$8 sps:$4 sm:$0xff]  }
  0x19   :  { %60 = vperm.xlu0 %1504, %v49_v4   ;;  %v1515_v20 = vld [vmem:[%s2156_s1 + $0x30] sm:$0xff]   ;;  %v1519_v21 = vld [vmem:[%s2156_s1 + $0x38] sm:$0xff]   ;;  %v1839_v32 = vld [vmem:[%s2157_s2] ss:$0 sm:$0xff]  ;;  %s1673_s2 = smov 32  }
  0x1a   :  { %1463 = vmatpush3.bf16.msra.mxu0 %v1507_v6  ;;  %v1866_v60 = vld [vmem:[%s2159_s4] ss:$0 sm:$0xff] }
  0x1b   :  { %1464 = vmatprep.subr.bf16.mxu0 %v1508_v8  ;;  %323 = vmatpush1.bf16.msra.mxu1 %v1778_v13 }
  0x1c   :  { %324 = vmatprep.subr.bf16.mxu1 %v1781_v14 }
  0x1d   :  { %269 = vrot.lane.b32.xlu0 %v1760_v7, %s1670_s17 }
  0x1e   :  { %1465 = vmatpush3.bf16.msra.mxu0 %v1508_v8 }
  0x1f   :  { %1466 = vmatprep.subr.bf16.mxu0 %v1509_v11  ;;  %325 = vmatpush1.bf16.msra.mxu1 %v1786_v16 }
  0x20   :  { %326 = vmatprep.subr.bf16.mxu1 %v1790_v17 }
  0x22   :  { %1467 = vmatpush3.bf16.msra.mxu0 %v1509_v11 }
  0x23   :  { %1468 = vmatprep.subr.bf16.mxu0 %v1510_v15  ;;  %327 = vmatpush1.bf16.msra.mxu1 %v1796_v19 }
  0x24   :  { %394 = vmatprep.subr.bf16.mxu1 %v1765_v9 }
  0x26   :  { %1469 = vmatpush3.bf16.msra.mxu0 %v1510_v15 }
  0x27   :  { %1470 = vmatprep.subr.bf16.mxu0 %v1511_v18 }
  0x2a   :  { %1471 = vmatpush3.bf16.msra.mxu0 %v1511_v18 }
  0x2b   :  { %1472 = vmatprep.subr.bf16.mxu0 %v1515_v20 }
  0x2e   :  { %1473 = vmatpush3.bf16.msra.mxu0 %v1515_v20 }
  0x2f   :  { %1474 = vmatprep.subr.bf16.mxu0 %v1519_v21 }
  0x32   :  { %1475 = vmatpush3.bf16.msra.mxu0 %v1519_v21 }
  0x33   :  { %507 = vmatprep.subr.bf16.mxu0 %v1765_v9 }
  0x93   :  { %v64_v23 = vpop.permute.xlu1 %63 }
  0x94   :  { %v58_v24 = vpop.permute.xlu0 %57  ;;  %vm82_vm0 = vcmp.eq.s32.totalorder %v1808_v25, %v64_v23 }
  0x95   :  { %vm80_vm3 = vcmp.eq.s32.totalorder %v1808_v25, %v58_v24 }
  0x97   :  { %v67_v26 = vpop.permute.xlu1 %66 }
  0x98   :  { %v61_v27 = vpop.permute.xlu0 %60  ;;  %vm83_vm1 = vcmp.eq.s32.totalorder %v1808_v25, %v67_v26 }
  0x99   :  { %vm81_vm2 = vcmp.eq.s32.totalorder %v1808_v25, %v61_v27  ;;  %vm1395_vm4 = vmpackc.low %vm83_vm1, %vm82_vm0 }
  0x9a   :  { %vm1393_vm6 = vmpackc.low %vm81_vm2, %vm80_vm3 }
  0x9b   :  { %1476 = vmatprep.mubr.msk.bf16.mxu0 %vm1393_vm6, %v1671_v28 }
  0x9c   :  { %v270_v29 = vpop.permute.xlu0 %269  ;;  %1477 = vmatmul.mubr.msk.bf16.vlgmr.msra.gmra.mrb[0].mxu0 %vm1395_vm4, %v1671_v28 }
  0x9d   :  { %v273_v30 = vsel %vm272_vm5, %v1760_v7, %v270_v29  ;;  %508 = vmatpush1.bf16.msra.mxu0 %v1767_v10 }
  0x9e   :  { %v274_v31 = vpack.c.bf16 %v273_v30, %v273_v30  ;;  %509 = vmatprep.subr.bf16.mxu0 %v1775_v12 }
  0xa0   :  { %1410 = vmatmul.mubr.msk.bf16.vlgmr.msra.gmra.mrb[0].mxu1 %vm316_vm7, %v274_v31 }
  0xa1   :  { %395 = vmatpush1.bf16.msra.mxu1 %v1767_v10  ;;  %426 = vmatprep.mubr.bf16.mxu1 %v1669_v0 }
  0xa2   :  { %396 = vmatprep.subr.bf16.mxu1 %v1775_v12  ;;  %510 = vmatpush1.bf16.msra.mxu0 %v1778_v13 }
  0xa3   :  { %511 = vmatprep.subr.bf16.mxu0 %v1781_v14 }
  0xa5   :  { %397 = vmatpush1.bf16.msra.mxu1 %v1778_v13 }
  0xa6   :  { %398 = vmatprep.subr.bf16.mxu1 %v1781_v14  ;;  %512 = vmatpush1.bf16.msra.mxu0 %v1786_v16 }
  0xa7   :  { %513 = vmatprep.subr.bf16.mxu0 %v1790_v17 }
  0xa9   :  { %399 = vmatpush1.bf16.msra.mxu1 %v1786_v16 }
  0xaa   :  { %400 = vmatprep.subr.bf16.mxu1 %v1790_v17  ;;  %514 = vmatpush1.bf16.msra.mxu0 %v1796_v19 }
  0xab   :  { %727 = vmatprep.subr.bf16.mxu0 %v1765_v9 }
  0xad   :  { %401 = vmatpush1.bf16.msra.mxu1 %v1796_v19 }
  0xae   :  { %617 = vmatprep.subr.bf16.mxu1 %v1765_v9 }
 0x16f   :  { %v1841_v33 = vpop.f32.mrb[0].mxu0 }
 0x170   :  { %v213_v34 = vpop.f32.mrb[1].mxu0 }
 0x171   :  { %v214_v35 = vadd.f32 %v1839_v32, %v213_v34  ;;  %v1844_v36 = vpop.f32.mrb[2].mxu0 }
 0x172   :  { %v216_v37 = vpop.f32.mrb[3].mxu0 }
 0x173   :  { %v354_v38 = vpop.f32.mrb[0].mxu1  ;;  %v217_v59 = vadd.f32 %v1839_v32, %v216_v37 }
 0x174   :  { %v355_v39 = vadd.f32 %v354_v38, %v214_v35  ;;  %v356_v40 = vpop.f32.mrb[1].mxu1 }
 0x175   :  { %v357_v41 = vpop.f32.mrb[2].mxu1 }
 0x176   :  { %1528 = vtanh.f32 %v355_v39  ;;  %v358_v42 = vpop.f32.mrb[3].mxu1  ;;  %v1411_v44 = vmul.f32 -1.442695, %v355_v39  ;;  %v53_v41 = vld [vmem:[%s2155_s0 + $0x28] sm:$0xff] }
 0x177   :  { %v52_v42 = vld [vmem:[%s2155_s0 + $0x20] sm:$0xff] }
 0x178   :  { %1530 = vpow2.f32 %v1411_v44  ;;  %v54_v44 = vld [vmem:[%s2155_s0 + $0x30] sm:$0xff] }
 0x180   :  { %v1529_v43 = vpop.eup %1528 }
 0x181   :  { %369 = vrot.lane.b32.xlu1 %v1529_v43, %s1672_s27  ;;  %v55_v43 = vld [vmem:[%s2155_s0 + $0x38] sm:$0xff] }
 0x182   :  { %v1531_v45 = vpop.eup %1530 }
 0x183   :  { %v363_v46 = vadd.f32 1.0, %v1531_v45 }
 0x185   :  { %1532 = vrcp.f32 %v363_v46 }
 0x18f   :  { %v1533_v47 = vpop.eup %1532 }
 0x190   :  { %v367_v50 = vmul.f32 %v1533_v47, %v1760_v7 }
 0x1f3   :  { %v370_v48 = vpop.permute.xlu1 %369 }
 0x1f4   :  { %v372_v49 = vmul.f32 %v1533_v47, %v370_v48 }
 0x1f6   :  { %374 = vrot.lane.b32.xlu0 %v372_v49, %s1673_s2 }
 0x268   :  { %v375_v51 = vpop.permute.xlu0 %374 }
 0x269   :  { %v377_v52 = vadd.f32 %v375_v51, %v367_v50 }
 0x26b   :  { %1534 = vtanh.f32 %v377_v52 }
 0x275   :  { %v1535_v53 = vpop.eup %1534 }
 0x276   :  { %380 = vrot.lane.b32.xlu1 %v1535_v53, %s1672_s27 }
 0x2e8   :  { %v381_v54 = vpop.permute.xlu1 %380 }
 0x2e9   :  { %v383_v55 = vmul.f32 %v1533_v47, %v381_v54 }
 0x2eb   :  { %385 = vrot.lane.b32.xlu0 %v383_v55, %s1673_s2 }
 0x35d   :  { %v386_v56 = vpop.permute.xlu0 %385 }
 0x35e   :  { %v388_v57 = vsel %vm272_vm5, %v386_v56, %v270_v29 }
 0x35f   :  { %v389_v58 = vpack.c.bf16 %v388_v57, %v388_v57 }
 0x361   :  { %1412 = vmatmul.mubr.msk.bf16.vlgmr.msra.gmra.mrb[4].mxu1 %vm316_vm7, %v389_v58 }
 0x362   :  { %618 = vmatpush1.bf16.msra.mxu1 %v1767_v10  ;;  %649 = vmatprep.mubr.bf16.mxu1 %v1669_v0 }
 0x363   :  { %619 = vmatprep.subr.bf16.mxu1 %v1775_v12 }
 0x366   :  { %620 = vmatpush1.bf16.msra.mxu1 %v1778_v13 }
 0x367   :  { %621 = vmatprep.subr.bf16.mxu1 %v1781_v14 }
 0x36a   :  { %622 = vmatpush1.bf16.msra.mxu1 %v1786_v16 }
 0x36b   :  { %623 = vmatprep.subr.bf16.mxu1 %v1790_v17 }
 0x36e   :  { %624 = vmatpush1.bf16.msra.mxu1 %v1796_v19 }
 0x36f   :  { %837 = vmatprep.subr.bf16.mxu1 %v1765_v9 }
 0x434   :  { %v428_v61 = vpop.f32.mrb[4].mxu1 }
 0x435   :  { %v429_v62 = vadd.f32 %v428_v61, %v217_v59  ;;  %v430_v63 = vpop.f32.mrb[5].mxu1  ;;  %v222_v59 = vadd.f32 %v1841_v33, %v1839_v32 }
 0x436   :  { %v431_v1 = vadd.f32 %v1866_v60, %v430_v63  ;;  %v432_v2 = vpop.f32.mrb[6].mxu1 }
 0x437   :  { %1536 = vtanh.f32 %v429_v62  ;;  %v433_v3 = vpop.f32.mrb[7].mxu1  ;;  %v1413_v6 = vmul.f32 -1.442695, %v429_v62 }
 0x438   :  { %1538 = vtanh.f32 %v431_v1  ;;  %v1414_v8 = vmul.f32 -1.442695, %v431_v1 }
 0x439   :  { %1540 = vpow2.f32 %v1413_v6 }
 0x43a   :  { %1542 = vpow2.f32 %v1414_v8 }
 0x441   :  { %v1537_v4 = vpop.eup %1536 }
 0x442   :  { %v1539_v5 = vpop.eup %1538  ;;  %451 = vrot.lane.b32.xlu1 %v1537_v4, %s1672_s27 }
 0x443   :  { %465 = vrot.lane.b32.xlu0 %v1539_v5, %s1672_s27  ;;  %v1541_v11 = vpop.eup %1540 }
 0x444   :  { %v441_v15 = vadd.f32 1.0, %v1541_v11  ;;  %v1543_v18 = vpop.eup %1542 }
 0x445   :  { %v442_v20 = vadd.f32 1.0, %v1543_v18 }
 0x446   :  { %1544 = vrcp.f32 %v441_v15 }
 0x447   :  { %460 = vrot.lane.b32.xlu0 %v1760_v7, %s1672_s27  ;;  %1546 = vrcp.f32 %v442_v20 }
 0x450   :  { %v1545_v21 = vpop.eup %1544 }
 0x451   :  { %v1547_v26 = vpop.eup %1546  ;;  %v449_v7 = vmul.f32 %v1545_v21, %v377_v52 }
 0x4b4   :  { %v452_v22 = vpop.permute.xlu1 %451 }
 0x4b5   :  { %v454_v23 = vmul.f32 %v1545_v21, %v452_v22  ;;  %v466_v24 = vpop.permute.xlu0 %465 }
 0x4b6   :  { %v468_v27 = vmul.f32 %v1547_v26, %v466_v24 }
 0x4b7   :  { %456 = vrot.lane.b32.xlu1 %v454_v23, %s1673_s2 }
 0x4b9   :  { %v461_v31 = vpop.permute.xlu0 %460 }
 0x4ba   :  { %v463_v35 = vmul.f32 %v1547_v26, %v461_v31 }
 0x4bb   :  { %470 = vrot.lane.b32.xlu1 %v468_v27, %s1673_s2 }
 0x529   :  { %v457_v29 = vpop.permute.xlu1 %456 }
 0x52a   :  { %v1875_v30 = vadd.f32 %v457_v29, %v449_v7 }
 0x52c   :  { %475 = vrot.lane.b32.xlu0 %v1875_v30, %s1670_s17 }
 0x52d   :  { %v471_v34 = vpop.permute.xlu1 %470 }
 0x52e   :  { %v1879_v37 = vadd.f32 %v471_v34, %v463_v35 }
 0x59e   :  { %v476_v38 = vpop.permute.xlu0 %475 }
 0x59f   :  { %v478_v39 = vsel %vm272_vm5, %v476_v38, %v1879_v37 }
 0x5a0   :  { %1548 = vtanh.f32 %v478_v39 }
 0x5aa   :  { %v1549_v40 = vpop.eup %1548 }
 0x5ab   :  { %485 = vrot.lane.b32.xlu0 %v1549_v40, %s1672_s27  ;;  %481 = vrot.lane.b32.xlu1 %v1549_v40, %s1670_s17 }
 0x5af   :  { %72 = vperm.xlu0 %1504, %v53_v41   ;;  %69 = vperm.xlu1 %1505, %v52_v42  }
 0x5b3   :  { %78 = vperm.xlu0 %1504, %v55_v43   ;;  %75 = vperm.xlu1 %1505, %v54_v44  }
 0x61d   :  { %v486_v45 = vpop.permute.xlu0 %485  ;;  %v482_v46 = vpop.permute.xlu1 %481 }
 0x61e   :  { %v1897_v47 = vmul.f32 %v1547_v26, %v486_v45  ;;  %v484_v48 = vmul.f32 %v1545_v21, %v482_v46 }
 0x620   :  { %498 = vrot.lane.b32.xlu0 %v1897_v47, %s1672_s27  ;;  %495 = vrot.lane.b32.xlu1 %v484_v48, %s1673_s2  ;;  %v225_v48 = vadd.f32 %v1844_v36, %v1839_v32 }
 0x62e   :  { %v73_v49 = vpop.permute.xlu0 %72  ;;  %v70_v50 = vpop.permute.xlu1 %69 }
 0x62f   :  { %vm85_vm8 = vcmp.eq.s32.totalorder %v1808_v25, %v73_v49  ;;  %vm84_vm9 = vcmp.eq.s32.totalorder %v1808_v25, %v70_v50 }
 0x630   :  { %vm1397_vm10 = vmpackc.low %vm85_vm8, %vm84_vm9 }
 0x631   :  { %1480 = vmatprep.mubr.msk.bf16.mxu0 %vm1397_vm10, %v1671_v28 }
 0x632   :  { %v79_v51 = vpop.permute.xlu0 %78  ;;  %v76_v52 = vpop.permute.xlu1 %75 }
 0x633   :  { %vm87_vm11 = vcmp.eq.s32.totalorder %v1808_v25, %v79_v51  ;;  %vm86_vm12 = vcmp.eq.s32.totalorder %v1808_v25, %v76_v52 }
 0x634   :  { %vm1399_vm13 = vmpackc.low %vm87_vm11, %vm86_vm12 }
 0x635   :  { %1481 = vmatmul.mubr.msk.bf16.gmra.mrb[4].mxu0 %vm1399_vm13, %v1671_v28 }
 0x636   :  { %539 = vmatprep.mubr.bf16.mxu0 %v1669_v0 }
 0x692   :  { %v499_v53 = vpop.permute.xlu0 %498  ;;  %v496_v54 = vpop.permute.xlu1 %495 }
 0x693   :  { %v501_v55 = vsel %vm272_vm5, %v496_v54, %v499_v53 }
 0x694   :  { %v502_v56 = vpack.c.bf16 %v501_v55, %v501_v55 }
 0x696   :  { %1415 = vmatmul.mubr.msk.bf16.vlgmr.msra.gmra.mrb[8].mxu0 %vm316_vm7, %v502_v56 }
 0x697   :  { %728 = vmatpush1.bf16.msra.mxu0 %v1767_v10  ;;  %759 = vmatprep.mubr.bf16.mxu0 %v1669_v0 }
 0x698   :  { %729 = vmatprep.subr.bf16.mxu0 %v1775_v12 }
 0x69b   :  { %730 = vmatpush1.bf16.msra.mxu0 %v1778_v13 }
 0x69c   :  { %731 = vmatprep.subr.bf16.mxu0 %v1781_v14 }
 0x69f   :  { %732 = vmatpush1.bf16.msra.mxu0 %v1786_v16 }
 0x6a0   :  { %733 = vmatprep.subr.bf16.mxu0 %v1790_v17 }
 0x6a3   :  { %734 = vmatpush1.bf16.msra.mxu0 %v1796_v19 }
 0x6a4   :  { %947 = vmatprep.subr.bf16.mxu0 %v1765_v9 }
 0x708   :  { %v1920_v25 = vpop.f32.mrb[4].mxu0 }
 0x709   :  { %v1922_v28 = vpop.f32.mrb[5].mxu0 }
 0x70a   :  { %v1924_v57 = vpop.f32.mrb[6].mxu0 }
 0x70b   :  { %v1926_v58 = vpop.f32.mrb[7].mxu0 }
 0x769   :  { %v541_v61 = vpop.f32.mrb[8].mxu0 }
 0x76a   :  { %v542_v62 = vadd.f32 %v541_v61, %v222_v59  ;;  %v543_v63 = vpop.f32.mrb[9].mxu0 }
 0x76b   :  { %v544_v1 = vadd.f32 %v1866_v60, %v543_v63  ;;  %v545_v2 = vpop.f32.mrb[10].mxu0 }
 0x76c   :  { %1550 = vtanh.f32 %v542_v62  ;;  %v546_v3 = vpop.f32.mrb[11].mxu0  ;;  %v1416_v6 = vmul.f32 -1.442695, %v542_v62 }
 0x76d   :  { %1552 = vtanh.f32 %v544_v1  ;;  %v1417_v8 = vmul.f32 -1.442695, %v544_v1 }
 0x76e   :  { %1554 = vpow2.f32 %v1416_v6 }
 0x76f   :  { %1556 = vpow2.f32 %v1417_v8 }
 0x776   :  { %v1551_v4 = vpop.eup %1550 }
 0x777   :  { %v1553_v5 = vpop.eup %1552  ;;  %564 = vrot.lane.b32.xlu1 %v1551_v4, %s1672_s27 }
 0x778   :  { %575 = vrot.lane.b32.xlu0 %v1553_v5, %s1672_s27  ;;  %v1555_v33 = vpop.eup %1554 }
 0x779   :  { %v1557_v11 = vpop.eup %1556  ;;  %v554_v15 = vadd.f32 1.0, %v1555_v33 }
 0x77a   :  { %v555_v18 = vadd.f32 1.0, %v1557_v11 }
 0x77b   :  { %1558 = vrcp.f32 %v554_v15 }
 0x77c   :  { %1560 = vrcp.f32 %v555_v18 }
 0x785   :  { %v1559_v20 = vpop.eup %1558 }
 0x786   :  { %v1561_v22 = vpop.eup %1560  ;;  %v562_v27 = vmul.f32 %v1559_v20, %v1875_v30 }
 0x787   :  { %v573_v34 = vmul.f32 %v1561_v22, %v1879_v37 }
 0x7e9   :  { %v565_v21 = vpop.permute.xlu1 %564 }
 0x7ea   :  { %v567_v23 = vmul.f32 %v1559_v20, %v565_v21  ;;  %v576_v24 = vpop.permute.xlu0 %575 }
 0x7eb   :  { %v578_v26 = vmul.f32 %v1561_v22, %v576_v24 }
 0x7ec   :  { %569 = vrot.lane.b32.xlu1 %v567_v23, %s1673_s2 }
 0x7ed   :  { %580 = vrot.lane.b32.xlu0 %v578_v26, %s1673_s2 }
 0x85e   :  { %v570_v7 = vpop.permute.xlu1 %569 }
 0x85f   :  { %v572_v29 = vadd.f32 %v570_v7, %v562_v27  ;;  %v581_v31 = vpop.permute.xlu0 %580 }
 0x860   :  { %v1938_v35 = vadd.f32 %v581_v31, %v573_v34 }
 0x861   :  { %585 = vrot.lane.b32.xlu1 %v572_v29, %s1670_s17 }
 0x8d3   :  { %v586_v38 = vpop.permute.xlu1 %585 }
 0x8d4   :  { %v588_v39 = vsel %vm272_vm5, %v586_v38, %v1938_v35 }
 0x8d5   :  { %1562 = vtanh.f32 %v588_v39  ;;  %v230_v39 = vadd.f32 %v1839_v32, %v1922_v28 }
 0x8df   :  { %v1563_v40 = vpop.eup %1562 }
 0x8e0   :  { %595 = vrot.lane.b32.xlu1 %v1563_v40, %s1672_s27  ;;  %591 = vrot.lane.b32.xlu0 %v1563_v40, %s1670_s17 }
 0x952   :  { %v596_v30 = vpop.permute.xlu1 %595  ;;  %v592_v41 = vpop.permute.xlu0 %591 }
 0x953   :  { %v1944_v42 = vmul.f32 %v1561_v22, %v596_v30  ;;  %v594_v43 = vmul.f32 %v1559_v20, %v592_v41 }
 0x955   :  { %608 = vrot.lane.b32.xlu1 %v1944_v42, %s1672_s27  ;;  %605 = vrot.lane.b32.xlu0 %v594_v43, %s1673_s2 }
 0x9c7   :  { %v609_v37 = vpop.permute.xlu1 %608  ;;  %v606_v44 = vpop.permute.xlu0 %605 }
 0x9c8   :  { %v611_v45 = vsel %vm272_vm5, %v606_v44, %v609_v37 }
 0x9c9   :  { %v612_v46 = vpack.c.bf16 %v611_v45, %v611_v45 }
 0x9cb   :  { %1418 = vmatmul.mubr.msk.bf16.vlgmr.msra.gmra.mrb[8].mxu1 %vm316_vm7, %v612_v46 }
 0x9cc   :  { %838 = vmatpush1.bf16.msra.mxu1 %v1767_v10  ;;  %869 = vmatprep.mubr.bf16.mxu1 %v1669_v0 }
 0x9cd   :  { %839 = vmatprep.subr.bf16.mxu1 %v1775_v12 }
 0x9d0   :  { %840 = vmatpush1.bf16.msra.mxu1 %v1778_v13 }
 0x9d1   :  { %841 = vmatprep.subr.bf16.mxu1 %v1781_v14 }
 0x9d4   :  { %842 = vmatpush1.bf16.msra.mxu1 %v1786_v16 }
 0x9d5   :  { %843 = vmatprep.subr.bf16.mxu1 %v1790_v17 }
 0x9d8   :  { %844 = vmatpush1.bf16.msra.mxu1 %v1796_v19 }
 0x9d9   :  { %1057 = vmatprep.subr.bf16.mxu1 %v1765_v9 }
 0xa9e   :  { %v651_v49 = vpop.f32.mrb[8].mxu1 }
 0xa9f   :  { %v652_v50 = vadd.f32 %v651_v49, %v225_v48  ;;  %v653_v51 = vpop.f32.mrb[9].mxu1 }
 0xaa0   :  { %v654_v52 = vadd.f32 %v1866_v60, %v653_v51  ;;  %v655_v53 = vpop.f32.mrb[10].mxu1 }
 0xaa1   :  { %1564 = vtanh.f32 %v652_v50  ;;  %v656_v54 = vpop.f32.mrb[11].mxu1  ;;  %v1419_v59 = vmul.f32 -1.442695, %v652_v50 }
 0xaa2   :  { %1566 = vtanh.f32 %v654_v52  ;;  %v1420_v61 = vmul.f32 -1.442695, %v654_v52 }
 0xaa3   :  { %1568 = vpow2.f32 %v1419_v59 }
 0xaa4   :  { %1570 = vpow2.f32 %v1420_v61 }
 0xaab   :  { %v1565_v55 = vpop.eup %1564 }
 0xaac   :  { %v1567_v56 = vpop.eup %1566  ;;  %674 = vrot.lane.b32.xlu0 %v1565_v55, %s1672_s27 }
 0xaad   :  { %685 = vrot.lane.b32.xlu1 %v1567_v56, %s1672_s27  ;;  %v1569_v36 = vpop.eup %1568 }
 0xaae   :  { %v1571_v62 = vpop.eup %1570  ;;  %v664_v63 = vadd.f32 1.0, %v1569_v36 }
 0xaaf   :  { %v665_v1 = vadd.f32 1.0, %v1571_v62 }
 0xab0   :  { %1572 = vrcp.f32 %v664_v63 }
 0xab1   :  { %1574 = vrcp.f32 %v665_v1 }
 0xaba   :  { %v1573_v2 = vpop.eup %1572 }
 0xabb   :  { %v1575_v4 = vpop.eup %1574  ;;  %v672_v33 = vmul.f32 %v1573_v2, %v572_v29 }
 0xabc   :  { %v683_v20 = vmul.f32 %v1575_v4, %v1938_v35 }
 0xb1e   :  { %v675_v3 = vpop.permute.xlu0 %674 }
 0xb1f   :  { %v677_v5 = vmul.f32 %v1573_v2, %v675_v3  ;;  %v686_v6 = vpop.permute.xlu1 %685 }
 0xb20   :  { %v688_v8 = vmul.f32 %v1575_v4, %v686_v6 }
 0xb21   :  { %679 = vrot.lane.b32.xlu0 %v677_v5, %s1673_s2 }
 0xb22   :  { %690 = vrot.lane.b32.xlu1 %v688_v8, %s1673_s2 }
 0xb93   :  { %v680_v11 = vpop.permute.xlu0 %679 }
 0xb94   :  { %v682_v15 = vadd.f32 %v680_v11, %v672_v33  ;;  %v691_v18 = vpop.permute.xlu1 %690 }
 0xb95   :  { %v1969_v21 = vadd.f32 %v691_v18, %v683_v20 }
 0xb96   :  { %695 = vrot.lane.b32.xlu0 %v682_v15, %s1670_s17 }
 0xc08   :  { %v696_v22 = vpop.permute.xlu0 %695 }
 0xc09   :  { %v698_v23 = vsel %vm272_vm5, %v696_v22, %v1969_v21  ;;  %v233_v22 = vadd.f32 %v1839_v32, %v1926_v58 }
 0xc0a   :  { %1576 = vtanh.f32 %v698_v23 }
 0xc14   :  { %v1577_v24 = vpop.eup %1576 }
 0xc15   :  { %705 = vrot.lane.b32.xlu0 %v1577_v24, %s1672_s27  ;;  %701 = vrot.lane.b32.xlu1 %v1577_v24, %s1670_s17 }
 0xc87   :  { %v706_v26 = vpop.permute.xlu0 %705  ;;  %v702_v27 = vpop.permute.xlu1 %701 }
 0xc88   :  { %v1975_v7 = vmul.f32 %v1575_v4, %v706_v26  ;;  %v704_v29 = vmul.f32 %v1573_v2, %v702_v27 }
 0xc8a   :  { %718 = vrot.lane.b32.xlu0 %v1975_v7, %s1672_s27  ;;  %715 = vrot.lane.b32.xlu1 %v704_v29, %s1673_s2 }
 0xcfc   :  { %v719_v31 = vpop.permute.xlu0 %718  ;;  %v716_v34 = vpop.permute.xlu1 %715 }
 0xcfd   :  { %v721_v35 = vsel %vm272_vm5, %v716_v34, %v719_v31 }
 0xcfe   :  { %v722_v38 = vpack.c.bf16 %v721_v35, %v721_v35 }
 0xd00   :  { %1421 = vmatmul.mubr.msk.bf16.vlgmr.msra.gmra.mrb[12].mxu0 %vm316_vm7, %v722_v38 }
 0xd01   :  { %948 = vmatpush1.bf16.msra.mxu0 %v1767_v10  ;;  %979 = vmatprep.mubr.bf16.mxu0 %v1669_v0 }
 0xd02   :  { %949 = vmatprep.subr.bf16.mxu0 %v1775_v12 }
 0xd05   :  { %950 = vmatpush1.bf16.msra.mxu0 %v1778_v13 }
 0xd06   :  { %951 = vmatprep.subr.bf16.mxu0 %v1781_v14 }
 0xd09   :  { %952 = vmatpush1.bf16.msra.mxu0 %v1786_v16 }
 0xd0a   :  { %953 = vmatprep.subr.bf16.mxu0 %v1790_v17 }
 0xd0d   :  { %954 = vmatpush1.bf16.msra.mxu0 %v1796_v19 }
 0xd0e   :  { %1166 = vmatprep.subr.bf16.mxu0 %v1765_v9 }
 0xdd3   :  { %v761_v40 = vpop.f32.mrb[12].mxu0 }
 0xdd4   :  { %v762_v30 = vadd.f32 %v761_v40, %v230_v39  ;;  %v763_v41 = vpop.f32.mrb[13].mxu0 }
 0xdd5   :  { %v764_v43 = vadd.f32 %v1866_v60, %v763_v41  ;;  %v765_v37 = vpop.f32.mrb[14].mxu0 }
 0xdd6   :  { %1578 = vtanh.f32 %v762_v30  ;;  %v766_v44 = vpop.f32.mrb[15].mxu0  ;;  %v1422_v48 = vmul.f32 -1.442695, %v762_v30 }
 0xdd7   :  { %1580 = vtanh.f32 %v764_v43  ;;  %v1423_v9 = vmul.f32 -1.442695, %v764_v43 }
 0xdd8   :  { %1582 = vpow2.f32 %v1422_v48 }
 0xdd9   :  { %1584 = vpow2.f32 %v1423_v9 }
 0xde0   :  { %v1579_v45 = vpop.eup %1578 }
 0xde1   :  { %v1581_v46 = vpop.eup %1580  ;;  %784 = vrot.lane.b32.xlu1 %v1579_v45, %s1672_s27 }
 0xde2   :  { %795 = vrot.lane.b32.xlu0 %v1581_v46, %s1672_s27  ;;  %v1583_v28 = vpop.eup %1582 }
 0xde3   :  { %v1585_v49 = vpop.eup %1584  ;;  %v774_v50 = vadd.f32 1.0, %v1583_v28 }
 0xde4   :  { %v775_v51 = vadd.f32 1.0, %v1585_v49 }
 0xde5   :  { %1586 = vrcp.f32 %v774_v50 }
 0xde6   :  { %1588 = vrcp.f32 %v775_v51 }
 0xdef   :  { %v1587_v52 = vpop.eup %1586 }
 0xdf0   :  { %v1589_v54 = vpop.eup %1588  ;;  %v782_v61 = vmul.f32 %v1587_v52, %v682_v15 }
 0xdf1   :  { %v793_v1 = vmul.f32 %v1589_v54, %v1969_v21 }
 0xe53   :  { %v785_v53 = vpop.permute.xlu1 %784 }
 0xe54   :  { %v787_v55 = vmul.f32 %v1587_v52, %v785_v53  ;;  %v796_v56 = vpop.permute.xlu0 %795 }
 0xe55   :  { %v798_v59 = vmul.f32 %v1589_v54, %v796_v56 }
 0xe56   :  { %789 = vrot.lane.b32.xlu1 %v787_v55, %s1673_s2 }
 0xe57   :  { %800 = vrot.lane.b32.xlu0 %v798_v59, %s1673_s2 }
 0xec8   :  { %v790_v36 = vpop.permute.xlu1 %789 }
 0xec9   :  { %v792_v62 = vadd.f32 %v790_v36, %v782_v61  ;;  %v801_v63 = vpop.permute.xlu0 %800 }
 0xeca   :  { %v803_v2 = vadd.f32 %v801_v63, %v793_v1 }
 0xecb   :  { %805 = vrot.lane.b32.xlu1 %v792_v62, %s1670_s17 }
 0xf3d   :  { %v806_v3 = vpop.permute.xlu1 %805 }
 0xf3e   :  { %v808_v4 = vsel %vm272_vm5, %v806_v3, %v803_v2  ;;  %v238_v3 = vadd.f32 %v1920_v25, %v1839_v32 }
 0xf3f   :  { %1590 = vtanh.f32 %v808_v4 }
 0xf49   :  { %v1591_v5 = vpop.eup %1590 }
 0xf4a   :  { %815 = vrot.lane.b32.xlu1 %v1591_v5, %s1672_s27  ;;  %811 = vrot.lane.b32.xlu0 %v1591_v5, %s1670_s17 }
 0xfbc   :  { %v816_v6 = vpop.permute.xlu1 %815  ;;  %v812_v8 = vpop.permute.xlu0 %811 }
 0xfbd   :  { %v2003_v33 = vmul.f32 %v1589_v54, %v816_v6  ;;  %v814_v11 = vmul.f32 %v1587_v52, %v812_v8 }
 0xfbf   :  { %828 = vrot.lane.b32.xlu1 %v2003_v33, %s1672_s27  ;;  %825 = vrot.lane.b32.xlu0 %v814_v11, %s1673_s2 }
0x1031   :  { %v829_v15 = vpop.permute.xlu1 %828  ;;  %v826_v18 = vpop.permute.xlu0 %825 }
0x1032   :  { %v831_v20 = vsel %vm272_vm5, %v826_v18, %v829_v15 }
0x1033   :  { %v832_v21 = vpack.c.bf16 %v831_v20, %v831_v20 }
0x1035   :  { %1424 = vmatmul.mubr.msk.bf16.vlgmr.msra.gmra.mrb[12].mxu1 %vm316_vm7, %v832_v21 }
0x1036   :  { %1058 = vmatpush1.bf16.msra.mxu1 %v1767_v10  ;;  %1089 = vmatprep.mubr.bf16.mxu1 %v1669_v0 }
0x1037   :  { %1059 = vmatprep.subr.bf16.mxu1 %v1775_v12 }
0x103a   :  { %1060 = vmatpush1.bf16.msra.mxu1 %v1778_v13 }
0x103b   :  { %1061 = vmatprep.subr.bf16.mxu1 %v1781_v14 }
0x103e   :  { %1062 = vmatpush1.bf16.msra.mxu1 %v1786_v16 }
0x103f   :  { %1063 = vmatprep.subr.bf16.mxu1 %v1790_v17 }
0x1042   :  { %1064 = vmatpush1.bf16.msra.mxu1 %v1796_v19 }
0x1108   :  { %v871_v23 = vpop.f32.mrb[12].mxu1 }
0x1109   :  { %v872_v24 = vadd.f32 %v871_v23, %v233_v22  ;;  %v873_v26 = vpop.f32.mrb[13].mxu1 }
0x110a   :  { %v874_v27 = vadd.f32 %v1866_v60, %v873_v26  ;;  %v875_v29 = vpop.f32.mrb[14].mxu1 }
0x110b   :  { %1592 = vtanh.f32 %v872_v24  ;;  %v876_v31 = vpop.f32.mrb[15].mxu1  ;;  %v1425_v38 = vmul.f32 -1.442695, %v872_v24 }
0x110c   :  { %1594 = vtanh.f32 %v874_v27  ;;  %v1426_v39 = vmul.f32 -1.442695, %v874_v27 }
0x110d   :  { %1596 = vpow2.f32 %v1425_v38 }
0x110e   :  { %1598 = vpow2.f32 %v1426_v39 }
0x1115   :  { %v1593_v34 = vpop.eup %1592 }
0x1116   :  { %v1595_v35 = vpop.eup %1594  ;;  %894 = vrot.lane.b32.xlu0 %v1593_v34, %s1672_s27 }
0x1117   :  { %905 = vrot.lane.b32.xlu1 %v1595_v35, %s1672_s27  ;;  %v1597_v58 = vpop.eup %1596 }
0x1118   :  { %v1599_v40 = vpop.eup %1598  ;;  %v884_v30 = vadd.f32 1.0, %v1597_v58 }
0x1119   :  { %v885_v41 = vadd.f32 1.0, %v1599_v40 }
0x111a   :  { %1600 = vrcp.f32 %v884_v30 }
0x111b   :  { %1602 = vrcp.f32 %v885_v41 }
0x1124   :  { %v1601_v43 = vpop.eup %1600 }
0x1125   :  { %v1603_v44 = vpop.eup %1602  ;;  %v892_v9 = vmul.f32 %v1601_v43, %v792_v62 }
0x1126   :  { %v903_v51 = vmul.f32 %v1603_v44, %v803_v2 }
0x1188   :  { %v895_v37 = vpop.permute.xlu0 %894 }
0x1189   :  { %v897_v45 = vmul.f32 %v1601_v43, %v895_v37  ;;  %v906_v46 = vpop.permute.xlu1 %905 }
0x118a   :  { %v908_v48 = vmul.f32 %v1603_v44, %v906_v46  ;;  %v241_v46 = vadd.f32 %v1924_v57, %v1839_v32 }
0x118b   :  { %899 = vrot.lane.b32.xlu0 %v897_v45, %s1673_s2 }
0x118c   :  { %910 = vrot.lane.b32.xlu1 %v908_v48, %s1673_s2 }
0x11fd   :  { %v900_v28 = vpop.permute.xlu0 %899 }
0x11fe   :  { %v902_v49 = vadd.f32 %v900_v28, %v892_v9  ;;  %v911_v50 = vpop.permute.xlu1 %910 }
0x11ff   :  { %v913_v52 = vadd.f32 %v911_v50, %v903_v51 }
0x1200   :  { %915 = vrot.lane.b32.xlu0 %v902_v49, %s1670_s17 }
0x1272   :  { %v916_v53 = vpop.permute.xlu0 %915 }
0x1273   :  { %v918_v54 = vsel %vm272_vm5, %v916_v53, %v913_v52 }
0x1274   :  { %1604 = vtanh.f32 %v918_v54 }
0x127e   :  { %v1605_v55 = vpop.eup %1604 }
0x127f   :  { %925 = vrot.lane.b32.xlu0 %v1605_v55, %s1672_s27  ;;  %921 = vrot.lane.b32.xlu1 %v1605_v55, %s1670_s17 }
0x12f1   :  { %v926_v56 = vpop.permute.xlu0 %925  ;;  %v922_v59 = vpop.permute.xlu1 %921 }
0x12f2   :  { %v2029_v61 = vmul.f32 %v1603_v44, %v926_v56  ;;  %v924_v36 = vmul.f32 %v1601_v43, %v922_v59 }
0x12f4   :  { %938 = vrot.lane.b32.xlu0 %v2029_v61, %s1672_s27  ;;  %935 = vrot.lane.b32.xlu1 %v924_v36, %s1673_s2 }
0x1366   :  { %v939_v62 = vpop.permute.xlu0 %938  ;;  %v936_v63 = vpop.permute.xlu1 %935 }
0x1367   :  { %v941_v1 = vsel %vm272_vm5, %v936_v63, %v939_v62 }
0x1368   :  { %v942_v2 = vpack.c.bf16 %v941_v1, %v941_v1 }
0x136a   :  { %1427 = vmatmul.mubr.msk.bf16.vlgmr.msra.gmra.mrb[16].mxu0 %vm316_vm7, %v942_v2 }
0x136b   :  { %1167 = vmatpush1.bf16.msra.mxu0 %v1767_v10  ;;  %1198 = vmatprep.mubr.bf16.mxu0 %v1669_v0 }
0x136c   :  { %1168 = vmatprep.subr.bf16.mxu0 %v1775_v12 }
0x136f   :  { %1169 = vmatpush1.bf16.msra.mxu0 %v1778_v13 }
0x1370   :  { %1170 = vmatprep.subr.bf16.mxu0 %v1781_v14 }
0x1373   :  { %1171 = vmatpush1.bf16.msra.mxu0 %v1786_v16 }
0x1374   :  { %1172 = vmatprep.subr.bf16.mxu0 %v1790_v17 }
0x1377   :  { %1173 = vmatpush1.bf16.msra.mxu0 %v1796_v19 }
0x143d   :  { %v981_v4 = vpop.f32.mrb[16].mxu0 }
0x143e   :  { %v982_v5 = vadd.f32 %v981_v4, %v238_v3  ;;  %v983_v10 = vpop.f32.mrb[17].mxu0 }
0x143f   :  { %v984_v0 = vadd.f32 %v1866_v60, %v983_v10  ;;  %v985_v6 = vpop.f32.mrb[18].mxu0 }
0x1440   :  { %1606 = vtanh.f32 %v982_v5  ;;  %v986_v12 = vpop.f32.mrb[19].mxu0  ;;  %v1428_v16 = vmul.f32 -1.442695, %v982_v5 }
0x1441   :  { %1608 = vtanh.f32 %v984_v0  ;;  %v1429_v17 = vmul.f32 -1.442695, %v984_v0 }
0x1442   :  { %1610 = vpow2.f32 %v1428_v16 }
0x1443   :  { %1612 = vpow2.f32 %v1429_v17 }
0x144a   :  { %v1607_v13 = vpop.eup %1606 }
0x144b   :  { %v1609_v14 = vpop.eup %1608  ;;  %1004 = vrot.lane.b32.xlu1 %v1607_v13, %s1672_s27 }
0x144c   :  { %1015 = vrot.lane.b32.xlu0 %v1609_v14, %s1672_s27  ;;  %v1611_v19 = vpop.eup %1610 }
0x144d   :  { %v1613_v25 = vpop.eup %1612  ;;  %v994_v8 = vadd.f32 1.0, %v1611_v19 }
0x144e   :  { %v995_v11 = vadd.f32 1.0, %v1613_v25 }
0x144f   :  { %1614 = vrcp.f32 %v994_v8 }
0x1450   :  { %1616 = vrcp.f32 %v995_v11 }
0x1459   :  { %v1615_v15 = vpop.eup %1614 }
0x145a   :  { %v1617_v20 = vpop.eup %1616  ;;  %v1002_v24 = vmul.f32 %v1615_v15, %v902_v49 }
0x145b   :  { %v1013_v31 = vmul.f32 %v1617_v20, %v913_v52 }
0x14bd   :  { %v1005_v18 = vpop.permute.xlu1 %1004 }
0x14be   :  { %v1007_v21 = vmul.f32 %v1615_v15, %v1005_v18  ;;  %v1016_v22 = vpop.permute.xlu0 %1015 }
0x14bf   :  { %v1018_v23 = vmul.f32 %v1617_v20, %v1016_v22 }
0x14c0   :  { %1009 = vrot.lane.b32.xlu1 %v1007_v21, %s1673_s2 }
0x14c1   :  { %1020 = vrot.lane.b32.xlu0 %v1018_v23, %s1673_s2 }
0x1532   :  { %v1010_v26 = vpop.permute.xlu1 %1009 }
0x1533   :  { %v1012_v27 = vadd.f32 %v1010_v26, %v1002_v24  ;;  %v1021_v29 = vpop.permute.xlu0 %1020 }
0x1534   :  { %v1023_v34 = vadd.f32 %v1021_v29, %v1013_v31 }
0x1535   :  { %1025 = vrot.lane.b32.xlu1 %v1012_v27, %s1670_s17 }
0x15a7   :  { %v1026_v35 = vpop.permute.xlu1 %1025 }
0x15a8   :  { %v1028_v38 = vsel %vm272_vm5, %v1026_v35, %v1023_v34 }
0x15a9   :  { %1618 = vtanh.f32 %v1028_v38 }
0x15b3   :  { %v1619_v39 = vpop.eup %1618 }
0x15b4   :  { %1035 = vrot.lane.b32.xlu1 %v1619_v39, %s1672_s27  ;;  %1031 = vrot.lane.b32.xlu0 %v1619_v39, %s1670_s17 }
0x1626   :  { %v1036_v58 = vpop.permute.xlu1 %1035  ;;  %v1032_v40 = vpop.permute.xlu0 %1031 }
0x1627   :  { %v2055_v30 = vmul.f32 %v1617_v20, %v1036_v58  ;;  %v1034_v41 = vmul.f32 %v1615_v15, %v1032_v40 }
0x1629   :  { %1048 = vrot.lane.b32.xlu1 %v2055_v30, %s1672_s27  ;;  %1045 = vrot.lane.b32.xlu0 %v1034_v41, %s1673_s2 }
0x169b   :  { %v1049_v43 = vpop.permute.xlu1 %1048  ;;  %v1046_v37 = vpop.permute.xlu0 %1045 }
0x169c   :  { %v1051_v44 = vsel %vm272_vm5, %v1046_v37, %v1049_v43  ;;  %v1527_v37 = vld [vmem:[%s2161_s6 + $0x8] sm:$0xff]  }
0x169d   :  { %v1052_v45 = vpack.c.bf16 %v1051_v44, %v1051_v44 }
0x169f   :  { %1430 = vmatmul.mubr.msk.bf16.vlgmr.msra.gmra.mrb[16].mxu1 %vm316_vm7, %v1052_v45 }
0x1772   :  { %v1091_v48 = vpop.f32.mrb[16].mxu1 }
0x1773   :  { %v1092_v9 = vadd.f32 %v1091_v48, %v241_v46  ;;  %v1093_v28 = vpop.f32.mrb[17].mxu1 }
0x1774   :  { %v1094_v49 = vadd.f32 %v1866_v60, %v1093_v28  ;;  %v1095_v50 = vpop.f32.mrb[18].mxu1 }
0x1775   :  { %1620 = vtanh.f32 %v1092_v9  ;;  %v1096_v51 = vpop.f32.mrb[19].mxu1  ;;  %v1431_v54 = vmul.f32 -1.442695, %v1092_v9 }
0x1776   :  { %1622 = vtanh.f32 %v1094_v49  ;;  %v1432_v55 = vmul.f32 -1.442695, %v1094_v49 }
0x1777   :  { %1624 = vpow2.f32 %v1431_v54 }
0x1778   :  { %1626 = vpow2.f32 %v1432_v55 }
0x177f   :  { %v1621_v52 = vpop.eup %1620 }
0x1780   :  { %v1623_v53 = vpop.eup %1622  ;;  %1114 = vrot.lane.b32.xlu0 %v1621_v52, %s1672_s27 }
0x1781   :  { %1125 = vrot.lane.b32.xlu1 %v1623_v53, %s1672_s27  ;;  %v1625_v32 = vpop.eup %1624 }
0x1782   :  { %v1627_v57 = vpop.eup %1626  ;;  %v1104_v56 = vadd.f32 1.0, %v1625_v32 }
0x1783   :  { %v1105_v59 = vadd.f32 1.0, %v1627_v57 }
0x1784   :  { %1628 = vrcp.f32 %v1104_v56 }
0x1785   :  { %1630 = vrcp.f32 %v1105_v59 }
0x178e   :  { %v1629_v36 = vpop.eup %1628 }
0x178f   :  { %v1631_v63 = vpop.eup %1630  ;;  %v1112_v4 = vmul.f32 %v1629_v36, %v1012_v27 }
0x1790   :  { %v1123_v6 = vmul.f32 %v1631_v63, %v1023_v34 }
0x17f2   :  { %v1115_v62 = vpop.permute.xlu0 %1114 }
0x17f3   :  { %v1117_v1 = vmul.f32 %v1629_v36, %v1115_v62  ;;  %v1126_v2 = vpop.permute.xlu1 %1125 }
0x17f4   :  { %v1128_v3 = vmul.f32 %v1631_v63, %v1126_v2  ;;  %v1435_v2 = vld [vmem:[%s2162_s7] ss:$0 sm:$0xff] }
0x17f5   :  { %1119 = vrot.lane.b32.xlu0 %v1117_v1, %s1673_s2 }
0x17f6   :  { %1130 = vrot.lane.b32.xlu1 %v1128_v3, %s1673_s2 }
0x1867   :  { %v1120_v5 = vpop.permute.xlu0 %1119 }
0x1868   :  { %v2069_v10 = vadd.f32 %v1120_v5, %v1112_v4  ;;  %v1131_v0 = vpop.permute.xlu1 %1130 }
0x1869   :  { %v1133_v12 = vadd.f32 %v1131_v0, %v1123_v6 }
0x186a   :  { %1135 = vrot.lane.b32.xlu0 %v2069_v10, %s1670_s17 }
0x18dc   :  { %v1136_v13 = vpop.permute.xlu0 %1135 }
0x18dd   :  { %v1138_v14 = vsel %vm272_vm5, %v1136_v13, %v1133_v12 }
0x18de   :  { %1632 = vtanh.f32 %v1138_v14 }
0x18e8   :  { %v1633_v16 = vpop.eup %1632 }
0x18e9   :  { %1145 = vrot.lane.b32.xlu0 %v1633_v16, %s1672_s27  ;;  %1141 = vrot.lane.b32.xlu1 %v1633_v16, %s1670_s17 }
0x195b   :  { %v1146_v17 = vpop.permute.xlu0 %1145  ;;  %v1142_v19 = vpop.permute.xlu1 %1141 }
0x195c   :  { %v1148_v25 = vmul.f32 %v1631_v63, %v1146_v17  ;;  %v1144_v8 = vmul.f32 %v1629_v36, %v1142_v19 }
0x195e   :  { %1158 = vrot.lane.b32.xlu0 %v1148_v25, %s1672_s27  ;;  %1155 = vrot.lane.b32.xlu1 %v1144_v8, %s1673_s2 }
0x19d0   :  { %v1159_v11 = vpop.permute.xlu0 %1158  ;;  %v2078_v15 = vpop.permute.xlu1 %1155 }
0x19d1   :  { %v1161_v18 = vsel %vm272_vm5, %v2078_v15, %v1159_v11  ;;  %v1242_v57 = vsel %vm272_vm5, %v2078_v15, %v2069_v10 }
0x19d2   :  { %v1162_v20 = vpack.c.bf16 %v1161_v18, %v1161_v18 }
0x19d4   :  { %1433 = vmatmul.mubr.msk.bf16.vlgmr.msra.gmra.mrb[20].mxu0 %vm316_vm7, %v1162_v20 }
0x1aa7   :  { %v1200_v21 = vpop.f32.mrb[20].mxu0 }
0x1aa8   :  { %v1201_v22 = vpop.f32.mrb[21].mxu0 }
0x1aa9   :  { %v1202_v23 = vadd.f32 %v1866_v60, %v1201_v22  ;;  %v1203_v24 = vpop.f32.mrb[22].mxu0 }
0x1aaa   :  { %v1204_v26 = vpop.f32.mrb[23].mxu0 }
0x1aab   :  { %1634 = vtanh.f32 %v1202_v23  ;;  %v1434_v29 = vmul.f32 -1.442695, %v1202_v23 }
0x1aad   :  { %1636 = vpow2.f32 %v1434_v29 }
0x1ab5   :  { %v1635_v27 = vpop.eup %1634 }
0x1ab6   :  { %1215 = vrot.lane.b32.xlu1 %v1635_v27, %s1672_s27 }
0x1ab7   :  { %v1637_v31 = vpop.eup %1636 }
0x1ab8   :  { %v1209_v34 = vadd.f32 1.0, %v1637_v31 }
0x1aba   :  { %1638 = vrcp.f32 %v1209_v34 }
0x1ac4   :  { %v1639_v35 = vpop.eup %1638 }
0x1ac5   :  { %v1213_v60 = vmul.f32 %v1639_v35, %v1133_v12 }
0x1b28   :  { %v1216_v38 = vpop.permute.xlu1 %1215 }
0x1b29   :  { %v1218_v39 = vmul.f32 %v1639_v35, %v1216_v38 }
0x1b2b   :  { %1220 = vrot.lane.b32.xlu0 %v1218_v39, %s1673_s2 }
0x1b2f   :  { %490 = vrot.lane.b32.xlu0 %v1897_v47, %s1673_s2  ;;  %v1526_v47 = vld [vmem:[%s2161_s6] sm:$0xff]  }
0x1b30   :  { %1484 = vmatprep.subr.bf16.mxu1 %v1526_v47 }
0x1b31   :  { %1485 = vmatpush3.bf16.msra.mxu1 %v1526_v47 }
0x1b32   :  { %1486 = vmatprep.subr.bf16.mxu1 %v1527_v37 }
0x1b33   :  { %710 = vrot.lane.b32.xlu0 %v1975_v7, %s1673_s2 }
0x1b35   :  { %1487 = vmatpush3.bf16.msra.mxu1 %v1527_v37 }
0x1b37   :  { %930 = vrot.lane.b32.xlu0 %v2029_v61, %s1673_s2 }
0x1b3b   :  { %1150 = vrot.lane.b32.xlu0 %v1148_v25, %s1673_s2 }
0x1b9d   :  { %v1221_v58 = vpop.permute.xlu0 %1220 }
0x1b9e   :  { %v1223_v40 = vadd.f32 %v1221_v58, %v1213_v60 }
0x1ba0   :  { %1640 = vtanh.f32 %v1223_v40 }
0x1ba1   :  { %v491_v41 = vpop.permute.xlu0 %490 }
0x1ba2   :  { %493 = vst.msk [vmem:[#allocation3] sm:$0xff] %vm272_vm5, %v491_v41 }
0x1ba5   :  { %v711_v43 = vpop.permute.xlu0 %710 }
0x1ba6   :  { %713 = vst.msk [vmem:[#allocation3 + $0x10] sm:$0xff] %vm272_vm5, %v711_v43 }
0x1ba9   :  { %v931_v7 = vpop.permute.xlu0 %930  ;;  %v1247_v28 = vld [vmem:[#allocation3] sm:$0xff] }
0x1baa   :  { %v1641_v61 = vpop.eup %1640  ;;  %933 = vst.msk [vmem:[#allocation3 + $0x20] sm:$0xff] %vm272_vm5, %v931_v7 }
0x1bab   :  { %1226 = vrot.lane.b32.xlu1 %v1641_v61, %s1672_s27 }
0x1bad   :  { %v1151_v44 = vpop.permute.xlu0 %1150  ;;  %v1249_v49 = vld [vmem:[#allocation3 + $0x10] sm:$0xff] }
0x1bae   :  { %1153 = vst.msk [vmem:[#allocation3 + $0x30] sm:$0xff] %vm272_vm5, %v1151_v44 }
0x1baf   :  { %600 = vrot.lane.b32.xlu1 %v1944_v42, %s1673_s2 }
0x1bb1   :  { %v1251_v52 = vld [vmem:[#allocation3 + $0x20] sm:$0xff] }
0x1bb3   :  { %820 = vrot.lane.b32.xlu1 %v2003_v33, %s1673_s2 }
0x1bb5   :  { %v1253_v62 = vld [vmem:[#allocation3 + $0x30] sm:$0xff] }
0x1bb7   :  { %1040 = vrot.lane.b32.xlu1 %v2055_v30, %s1673_s2 }
0x1c1d   :  { %v1227_v45 = vpop.permute.xlu1 %1226 }
0x1c1e   :  { %v1229_v46 = vmul.f32 %v1639_v35, %v1227_v45 }
0x1c20   :  { %1235 = vrot.lane.b32.xlu0 %v1229_v46, %s1670_s17  ;;  %1231 = vrot.lane.b32.xlu1 %v1229_v46, %s1673_s2 }
0x1c21   :  { %v601_v48 = vpop.permute.xlu1 %600 }
0x1c22   :  { %603 = vst.msk [vmem:[#allocation3 + $0x8] sm:$0xff] %vm272_vm5, %v601_v48 }
0x1c24   :  { %1239 = vrot.lane.b32.xlu1 %v1223_v40, %s1672_s27 }
0x1c25   :  { %v821_v9 = vpop.permute.xlu1 %820 }
0x1c26   :  { %823 = vst.msk [vmem:[#allocation3 + $0x18] sm:$0xff] %vm272_vm5, %v821_v9 }
0x1c29   :  { %v1041_v42 = vpop.permute.xlu1 %1040  ;;  %v1248_v33 = vld [vmem:[#allocation3 + $0x8] sm:$0xff] }
0x1c2a   :  { %1043 = vst.msk [vmem:[#allocation3 + $0x28] sm:$0xff] %vm272_vm5, %v1041_v42  ;;  %v1255_v30 = vpack.c.bf16 %v1248_v33, %v1247_v28 }
0x1c2c   :  { %1488 = vmatprep.mubr.msk.bf16.mxu1 %vm272_vm5, %v1255_v30 }
0x1c2d   :  { %v1250_v50 = vld [vmem:[#allocation3 + $0x18] sm:$0xff] }
0x1c2e   :  { %v1256_v51 = vpack.c.bf16 %v1250_v50, %v1249_v49 }
0x1c30   :  { %1489 = vmatmul.mubr.msk.bf16.vlgmr.msra.gmra.mrb[20].mxu1 %vm272_vm5, %v1256_v51 }
0x1c31   :  { %v1252_v53 = vld [vmem:[#allocation3 + $0x28] sm:$0xff] }
0x1c32   :  { %v1257_v54 = vpack.c.bf16 %v1252_v53, %v1251_v52 }
0x1c34   :  { %1492 = vmatprep.mubr.msk.bf16.mxu1 %vm272_vm5, %v1257_v54 }
0x1c92   :  { %v1232_v55 = vpop.permute.xlu1 %1231  ;;  %v1236_v32 = vpop.permute.xlu0 %1235 }
0x1c93   :  { %1234 = vst.msk [vmem:[#allocation3 + $0x38] sm:$0xff] %vm272_vm5, %v1232_v55  ;;  %v1243_v56 = vsel %vm316_vm7, %v1242_v57, %v1236_v32 }
0x1c96   :  { %v1240_v59 = vpop.permute.xlu1 %1239 }
0x1c97   :  { %v1245_v36 = vsel %vm1244_vm14, %v1243_v56, %v1240_v59 }
0x1c98   :  { %1246 = vst [vmem:[%s2164_s9] sm:$0xff] %v1245_v36 }
0x1c9a   :  { %v1254_v63 = vld [vmem:[#allocation3 + $0x38] sm:$0xff] }
0x1c9b   :  { %v1258_v1 = vpack.c.bf16 %v1254_v63, %v1253_v62 }
0x1c9d   :  { %1493 = vmatmul.mubr.msk.bf16.gmra.mrb[24].mxu1 %vm272_vm5, %v1258_v1 }
0x1d03   :  { %v1490_v3 = vpop.f32.mrb[20].mxu1 }
0x1d04   :  { %v1337_v4 = vadd.f32 %v1490_v3, %v1435_v2  ;;  %v1328_v5 = vpop.f32.mrb[21].mxu1 }
0x1d05   :  { %v1329_v10 = vadd.f32 %v1435_v2, %v1328_v5  ;;  %v1491_v0 = vpop.f32.mrb[22].mxu1 }
0x1d06   :  { %1361 = vst [vmem:[%s2163_s8 + $0x10] sm:$0xff] %v1337_v4  ;;  %v1340_v6 = vadd.f32 %v1491_v0, %v1435_v2  ;;  %v1331_v12 = vpop.f32.mrb[23].mxu1 }
0x1d07   :  { %1359 = vst [vmem:[%s2163_s8] sm:$0xff] %v1329_v10  ;;  %v1332_v13 = vadd.f32 %v1435_v2, %v1331_v12 }
0x1d08   :  { %1362 = vst [vmem:[%s2163_s8 + $0x18] sm:$0xff] %v1340_v6 }
0x1d09   :  { %1360 = vst [vmem:[%s2163_s8 + $0x8] sm:$0xff] %v1332_v13 }
0x1d70   :  { %v1494_v14 = vpop.f32.mrb[24].mxu1 }
0x1d71   :  { %v1353_v16 = vadd.f32 %v1494_v14, %v1435_v2  ;;  %v1344_v17 = vpop.f32.mrb[25].mxu1 }
0x1d72   :  { %v1345_v19 = vadd.f32 %v1435_v2, %v1344_v17  ;;  %v1495_v25 = vpop.f32.mrb[26].mxu1 }
0x1d73   :  { %1365 = vst [vmem:[%s2163_s8 + $0x30] sm:$0xff] %v1353_v16  ;;  %v1356_v8 = vadd.f32 %v1495_v25, %v1435_v2  ;;  %v1347_v11 = vpop.f32.mrb[27].mxu1 }
0x1d74   :  { %1363 = vst [vmem:[%s2163_s8 + $0x20] sm:$0xff] %v1345_v19  ;;  %v1348_v15 = vadd.f32 %v1435_v2, %v1347_v11 }
0x1d75   :  { %1366 = vst [vmem:[%s2163_s8 + $0x38] sm:$0xff] %v1356_v8 }
0x1d76   :  { %1364 = vst [vmem:[%s2163_s8 + $0x28] sm:$0xff] %v1348_v15 }
0x1d77   :  { %1375 = vsyncpa [#allocation5], 1 }

</bundles_post_ra>
